<compile_context>
chip_gen: v5e
topology: v5e:2x2
jax: 0.10.0
libtpu: 0.0.40
codegen_flags: <defaults>
</compile_context>

<pallas_src>
import numpy as np
import jax
import jax.numpy as jnp
from jax import lax
from jax.experimental import pallas as pl
from jax.experimental.pallas import tpu as pltpu

H_IN = W_IN = 16
C_IN, C_OUT, K = 3, 16, 3
H_CONV = W_CONV = H_IN - K + 1        # 14 (valid conv)
H_POOL = W_POOL = H_CONV // 2         # 7  (maxpool 2x2, stride 2)
N_POOL = H_POOL * W_POOL              # 49
B_TILE = 32                           # samples per grid step
STRIP_K = 4 * W_IN * C_IN             # 192: 4 input rows x 16 cols x 3 ch per pooled row
N_COLS = 4 * 128                      # 512: 4 pool-window offsets q, each padded to 128 lanes
LANE_W = 128                          # output lanes: wp*16 + c (112 used, 16 zero pad)


def _build_gather():
    """Static placement tables mapping the (27,16) conv weight into the (192,512) GEMM weight.

    Row of the GEMM weight  = (dh*16 + iw)*3 + ci   (position inside the 4x16x3 input strip)
    Col of the GEMM weight  = q*128 + wp*16 + c     (pool-window offset q = qh*2+qw, pooled col wp)
    Entry = W[kh, kw, ci, c] when dh == qh+kh and iw == 2*wp+qw+kw, else 0.
    """
    src = np.zeros((4, H_POOL, STRIP_K), np.int32)
    msk = np.zeros((4, H_POOL, STRIP_K, 1), np.float32)
    for q in range(4):
        qh, qw = divmod(q, 2)
        for wp in range(W_POOL):
            for kh in range(K):
                for kw in range(K):
                    for ci in range(C_IN):
                        row = ((qh + kh) * W_IN + (2 * wp + qw + kw)) * C_IN + ci
                        src[q, wp, row] = (kh * K + kw) * C_IN + ci
                        msk[q, wp, row, 0] = 1.0
    return src, msk


_SRC, _MSK = _build_gather()


def conv_relu_pool_kernel(p_ref, w_ref, b_ref, o_ref):
    # p_ref: (B_TILE*8, 192)  row = b*8 + hp, cols = (dh*16 + iw)*3 + ci
    # w_ref: (192, 512)       cols = q*128 + wp*16 + c (q-block lanes 112..127 are zero)
    # b_ref: (1, 128)         lane wp*16 + c = bias[c] (lanes 112..127 zero)
    # o_ref: (B_TILE*8, 128)  lane-dense pooled output, row = b*8 + hp, lane = wp*16 + c
    y = jnp.dot(p_ref[...], w_ref[...], preferred_element_type=jnp.float32)   # (256, 512)
    # MaxPool2d(2): max over the 4 pool-window offsets; each slice is a full, vreg-aligned
    # 128-lane block -> plain aligned vmax, no strided/XLU work.
    t = jnp.maximum(jnp.maximum(y[:, 0:128], y[:, 128:256]),
                    jnp.maximum(y[:, 256:384], y[:, 384:512]))
    # bias + ReLU fused (relu/maxpool commute; bias is per-channel, identical for all q).
    o_ref[...] = jnp.maximum(t + b_ref[...], 0.0)


@jax.jit
def default_model_forward(x_nchw, weight_oihw, bias):
    """x: (N, 3, 16, 16), weight: (16, 3, 3, 3) [torch OIHW], bias: (16,) -> (N, 784)."""
    n = x_nchw.shape[0]
    n_pad = ((n + B_TILE - 1) // B_TILE) * B_TILE

    # ---- wrapper-side patch extraction: one 4x16x3 input strip per pooled output row ----
    x_nhwc = jnp.transpose(x_nchw.astype(jnp.float32), (0, 2, 3, 1))           # (n,16,16,3)
    strips = jnp.stack([x_nhwc[:, 2 * hp:2 * hp + 4, :, :] for hp in range(H_POOL)],
                       axis=1)                                                 # (n,7,4,16,3)
    strips = jnp.pad(strips, ((0, n_pad - n), (0, 1), (0, 0), (0, 0), (0, 0))) # hp 7->8, batch pad
    strips = strips.reshape(n_pad * 8, STRIP_K)                                # row = b*8 + hp

    # ---- build the fused conv+pool-window weight matrix (exact gather, no matmul rounding) ----
    w27 = jnp.transpose(weight_oihw.astype(jnp.float32), (2, 3, 1, 0)).reshape(K * K * C_IN, C_OUT)
    wE = w27[jnp.asarray(_SRC)] * jnp.asarray(_MSK)                            # (4,7,192,16)
    wE = jnp.pad(wE, ((0, 0), (0, 1), (0, 0), (0, 0)))                         # wp 7->8 (zero lanes)
    wE = jnp.transpose(wE, (2, 0, 1, 3)).reshape(STRIP_K, N_COLS)              # (192, 512)

    b_vec = jnp.concatenate([jnp.tile(bias.astype(jnp.float32), W_POOL),
                             jnp.zeros((LANE_W - W_POOL * C_OUT,), jnp.float32)]).reshape(1, LANE_W)

    out = pl.pallas_call(
        conv_relu_pool_kernel,
        out_shape=jax.ShapeDtypeStruct((n_pad * 8, LANE_W), jnp.float32),
        grid=(n_pad // B_TILE,),
        in_specs=[
            pl.BlockSpec((B_TILE * 8, STRIP_K), lambda i: (i, 0)),
            pl.BlockSpec((STRIP_K, N_COLS), lambda i: (0, 0)),
            pl.BlockSpec((1, LANE_W), lambda i: (0, 0)),
        ],
        out_specs=pl.BlockSpec((B_TILE * 8, LANE_W), lambda i: (i, 0)),
        compiler_params=pltpu.CompilerParams(dimension_semantics=("parallel",)),
    )(strips, wE, b_vec)

    # ---- tiny XLA epilogue: drop padding, reorder to torch flatten order (c, hp, wp) ----
    out = out.reshape(n_pad, 8, LANE_W)[:n, :H_POOL, :W_POOL * C_OUT]
    out = out.reshape(n, H_POOL, W_POOL, C_OUT)
    return jnp.transpose(out, (0, 3, 1, 2)).reshape(n, C_OUT * N_POOL)


def reference_forward(x_nchw, weight_oihw, bias):
    """Plain-JAX reference matching the PyTorch module."""
    y = lax.conv_general_dilated(
        x_nchw.astype(jnp.float32), weight_oihw.astype(jnp.float32),
        window_strides=(1, 1), padding="VALID",
        dimension_numbers=("NCHW", "OIHW", "NCHW"),
        precision=lax.Precision.HIGHEST)                                       # (N,16,14,14)
    y = jnp.maximum(y + bias.reshape(1, C_OUT, 1, 1), 0.0)
    n = y.shape[0]
    yp = y.reshape(n, C_OUT, H_POOL, 2, W_POOL, 2).max(axis=(3, 5))
    return yp.reshape(n, -1)


if __name__ == "__main__":
    key = jax.random.PRNGKey(0)
    kx, kw, kb = jax.random.split(key, 3)

    # Deterministic synthetic inputs/parameters (Conv2d(3,16,3): weight OIHW, bias (16,)).
    x = jax.random.normal(kx, (2, C_IN, H_IN, W_IN), dtype=jnp.float32)
    w = 0.1 * jax.random.normal(kw, (C_OUT, C_IN, K, K), dtype=jnp.float32)
    b = 0.1 * jax.random.normal(kb, (C_OUT,), dtype=jnp.float32)

    out = jax.block_until_ready(default_model_forward(x, w, b))
    ref = reference_forward(x, w, b)

    assert out.shape == (2, C_OUT * N_POOL), out.shape
    if not jnp.allclose(out, ref, rtol=2e-2, atol=2e-2):
        max_err = float(jnp.max(jnp.abs(out - ref)))
        raise AssertionError(f"mismatch vs reference, max abs err {max_err}")
    print("KERNEL_OK")
</pallas_src>

<mosaic_0001>
module attributes {stable_mosaic.version = 11 : i64} {
  func.func @conv_relu_pool_kernel(%arg0: i32, %arg1: memref<256x192xf32, #tpu.memory_space<vmem>>, %arg2: memref<192x512xf32, #tpu.memory_space<vmem>>, %arg3: memref<1x128xf32, #tpu.memory_space<vmem>>, %arg4: memref<256x128xf32, #tpu.memory_space<vmem>>) attributes {dimension_semantics = [#tpu.dimension_semantics<parallel>], iteration_bounds = array<i64: 1>, scalar_prefetch = 0 : i64, scratch_operands = 0 : i64, tpu.core_type = #tpu.core_type<tc>, window_params = [{transform_indices = @transform_0, window_bounds = array<i64: 256, 192>}, {pipeline_mode = #tpu.pipeline_mode<synchronous>, transform_indices = @transform_1, window_bounds = array<i64: 192, 512>}, {pipeline_mode = #tpu.pipeline_mode<synchronous>, transform_indices = @transform_2, window_bounds = array<i64: 1, 128>}, {transform_indices = @transform_3, window_bounds = array<i64: 256, 128>}]} {
    %c0 = arith.constant 0 : index
    %c0_0 = arith.constant 0 : index
    %0 = vector.load %arg1[%c0, %c0_0] : memref<256x192xf32, #tpu.memory_space<vmem>>, vector<256x192xf32>
    %c0_1 = arith.constant 0 : index
    %c0_2 = arith.constant 0 : index
    %1 = vector.load %arg2[%c0_1, %c0_2] : memref<192x512xf32, #tpu.memory_space<vmem>>, vector<192x512xf32>
    %cst = arith.constant dense<0.000000e+00> : vector<256x512xf32>
    %2 = tpu.matmul %0, %1, %cst {dimension_numbers = #tpu.dot_dimension_numbers<[1], [0], [0], [1], [0, 0, 1, 1], [], []>} : vector<256x192xf32>, vector<192x512xf32>, vector<256x512xf32> -> vector<256x512xf32>
    %3 = vector.extract_strided_slice %2 {offsets = [0, 0], sizes = [256, 128], strides = [1, 1]} : vector<256x512xf32> to vector<256x128xf32>
    %4 = vector.extract_strided_slice %2 {offsets = [0, 128], sizes = [256, 128], strides = [1, 1]} : vector<256x512xf32> to vector<256x128xf32>
    %5 = arith.maximumf %3, %4 : vector<256x128xf32>
    %6 = vector.extract_strided_slice %2 {offsets = [0, 256], sizes = [256, 128], strides = [1, 1]} : vector<256x512xf32> to vector<256x128xf32>
    %7 = vector.extract_strided_slice %2 {offsets = [0, 384], sizes = [256, 128], strides = [1, 1]} : vector<256x512xf32> to vector<256x128xf32>
    %8 = arith.maximumf %6, %7 : vector<256x128xf32>
    %9 = arith.maximumf %5, %8 : vector<256x128xf32>
    %c0_3 = arith.constant 0 : index
    %c0_4 = arith.constant 0 : index
    %10 = vector.load %arg3[%c0_3, %c0_4] : memref<1x128xf32, #tpu.memory_space<vmem>>, vector<1x128xf32>
    %11 = vector.broadcast %10 : vector<1x128xf32> to vector<256x128xf32>
    %12 = arith.addf %9, %11 : vector<256x128xf32>
    %cst_5 = arith.constant 0.000000e+00 : f32
    %13 = vector.broadcast %cst_5 : f32 to vector<256x128xf32>
    %14 = arith.maximumf %12, %13 : vector<256x128xf32>
    %c0_6 = arith.constant 0 : index
    %c0_7 = arith.constant 0 : index
    %15 = vector.load %arg4[%c0_6, %c0_7] : memref<256x128xf32, #tpu.memory_space<vmem>>, vector<256x128xf32>
    tpu.vector_store %arg4[%c0_6, %c0_7], %14 {strides = array<i32>} : memref<256x128xf32, #tpu.memory_space<vmem>>, vector<256x128xf32>,
    return
  }
  func.func @transform_0(%arg0: i32) -> (i32, i32) {
    %c0_i32 = arith.constant 0 : i32
    %c0_i32_0 = arith.constant 0 : i32
    return %arg0, %c0_i32 : i32, i32
  }
  func.func @transform_1(%arg0: i32) -> (i32, i32) {
    %c0_i32 = arith.constant 0 : i32
    %c0_i32_0 = arith.constant 0 : i32
    %c0_i32_1 = arith.constant 0 : i32
    return %c0_i32, %c0_i32_0 : i32, i32
  }
  func.func @transform_2(%arg0: i32) -> (i32, i32) {
    %c0_i32 = arith.constant 0 : i32
    %c0_i32_0 = arith.constant 0 : i32
    %c0_i32_1 = arith.constant 0 : i32
    return %c0_i32, %c0_i32_0 : i32, i32
  }
  func.func @transform_3(%arg0: i32) -> (i32, i32) {
    %c0_i32 = arith.constant 0 : i32
    %c0_i32_0 = arith.constant 0 : i32
    return %arg0, %c0_i32 : i32, i32
  }
}

</mosaic_0001>

<bundles_post_ra>
// kernel: tile.8
= control target key start
LH: loop header
LB: loop body
LE: loop exit
PB: predicated region body
PF: predicated region fallthrough
CT: control target
= control target key end

     0   :  { %s22_s0 = inlined_call_operand.vmem [shape: f32[16], index: 0, kind: input, shape index: {}]   ;;  %s23_s1 = inlined_call_operand.vmem [shape: f32[7,16], index: 1, kind: output, shape index: {}]  }
   0x1   :  { %v4_v0 = vld [vmem:[%s22_s0] ss:$0 sm:$0xff] }
   0x2   :  { %5 = vst [vmem:[%s23_s1] sm:$0xff] %v4_v0 }

// kernel: tile.9
= control target key start
LH: loop header
LB: loop body
LE: loop exit
PB: predicated region body
PF: predicated region fallthrough
CT: control target
= control target key end

     0   :  { %s59_s10 = smov 96   ;;  %s60_s11 = smov 64   ;;  %vm3_vm0 = vcmask 130048   ;;  %vm9_vm1 = vcmask 917248   ;;  %vm15_vm2 = vcmask 786048   ;;  %vm21_vm3 = vcmask 654848   ;;  %s99_s0 = inlined_call_operand.vmem [shape: f32[7,16], index: 0, kind: input, shape index: {}]   ;;  %s100_s1 = inlined_call_operand.vmem [shape: f32[112], index: 1, kind: output, shape index: {}]  }
   0x1   :  { %v47_v0 = vld [vmem:[%s99_s0 + $0x6] sm:$0x1]   ;;  %v49_v1 = vld [vmem:[%s99_s0 + $0x4] sm:$0x1]   ;;  %v51_v2 = vld [vmem:[%s99_s0 + $0x2] sm:$0x1]  }
   0x2   :  { %7 = vrot.lane.b32.xlu0 %v47_v0, %s59_s10  ;;  %19 = vrot.lane.b32.xlu1 %v49_v1, %s60_s11  ;;  %s61_s14 = smov 32   ;;  %v48_v3 = vld [vmem:[%s99_s0 + $0x5] sm:$0x1]   ;;  %v50_v4 = vld [vmem:[%s99_s0 + $0x3] sm:$0x1]   ;;  %s62_s21 = smov 80  }
   0x3   :  { %31 = vrot.lane.b32.xlu2 %v51_v2, %s61_s14  ;;  %v52_v5 = vld [vmem:[%s99_s0 + $0x1] sm:$0x1]   ;;  %s63_s22 = smov 48   ;;  %s64_s23 = smov 16   ;;  %v2_v6 = vld [vmem:[%s99_s0] sm:$0x1]  }
   0x4   :  { %4 = vst.msk [vmem:[#allocation0] sm:$0x1] %vm3_vm0, %v2_v6   ;;  %vm27_vm4 = vcmask 523648   ;;  %vm33_vm5 = vcmask 392448   ;;  %vm39_vm6 = vcmask 261248  }
   0xa   :  { %13 = vrot.lane.b32.xlu0 %v48_v3, %s62_s21  ;;  %25 = vrot.lane.b32.xlu1 %v50_v4, %s63_s22 }
   0xb   :  { %37 = vrot.lane.b32.xlu2 %v52_v5, %s64_s23 }
  0x5d   :  { %v32_v7 = vpop.permute.xlu2 %31  }
  0x65   :  { %v38_v8 = vpop.permute.xlu2 %37  }
  0x74   :  { %v8_v9 = vpop.permute.xlu0 %7   ;;  %v20_v10 = vpop.permute.xlu1 %19  }
  0x75   :  { %10 = vst.msk [vmem:[#allocation0] sm:$0x1] %vm9_vm1, %v8_v9  }
  0x7c   :  { %v14_v11 = vpop.permute.xlu0 %13   ;;  %v26_v12 = vpop.permute.xlu1 %25  }
  0x7d   :  { %16 = vst.msk [vmem:[#allocation0] sm:$0x1] %vm15_vm2, %v14_v11  }
  0x7e   :  { %22 = vst.msk [vmem:[#allocation0] sm:$0x1] %vm21_vm3, %v20_v10  }
  0x7f   :  { %28 = vst.msk [vmem:[#allocation0] sm:$0x1] %vm27_vm4, %v26_v12  }
  0x80   :  { %34 = vst.msk [vmem:[#allocation0] sm:$0x1] %vm33_vm5, %v32_v7  }
  0x81   :  { %40 = vst.msk [vmem:[#allocation0] sm:$0x1] %vm39_vm6, %v38_v8  }
  0x88   :  { %v43_v13 = vld [vmem:[#allocation0] sm:$0x1] }
  0x89   :  { %46 = vst [vmem:[%s100_s1] sm:$0x1] %v43_v13 }

// kernel: default_model_forward.1
= control target key start
LH: loop header
LB: loop body
LE: loop exit
PB: predicated region body
PF: predicated region fallthrough
CT: control target
= control target key end

     0   :  { %vm174_vm0 = vcmask 523264   ;;  %s3049_s1 = inlined_call_operand.vmem [shape: f32[192,512], index: 1, kind: input, shape index: {}]   ;;  %s3050_s0 = inlined_call_operand.vmem [shape: f32[256,192], index: 0, kind: input, shape index: {}]   ;;  %s3051_s2 = inlined_call_operand.vmem [shape: f32[1,128], index: 2, kind: input, shape index: {}]   ;;  %s3052_s3 = inlined_call_operand.vmem [shape: f32[256,128], index: 3, kind: output, shape index: {}]  }
   0x1   :  { %v138_v0 = vld [vmem:[%s3049_s1 + $0x1e0] sm:$0xff]  ;;  %v139_v1 = vld [vmem:[%s3049_s1 + $0x1e8] sm:$0xff]  ;;  %v172_v33 = vld [vmem:[%s3049_s1 + $0x2f0] sm:$0xff] }
   0x2   :  { %v171_v2 = vld [vmem:[%s3049_s1 + $0x2e8] sm:$0xff]  ;;  %271 = vmatpush.msra.mxu0 %v138_v0  ;;  %497 = vmatpush.msra.mxu2 %v139_v1  ;;  %v134_v3 = vld [vmem:[%s3049_s1 + $0x1c0] sm:$0xff]  ;;  %v140_v39 = vld [vmem:[%s3049_s1 + $0x1f0] sm:$0xff] }
   0x3   :  { %v135_v4 = vld [vmem:[%s3049_s1 + $0x1c8] sm:$0xff]  ;;  %618 = vmatpush.msra.mxu3 %v171_v2  ;;  %v130_v6 = vld [vmem:[%s3049_s1 + $0x1a0] sm:$0xff]  ;;  %v136_v42 = vld [vmem:[%s3049_s1 + $0x1d0] sm:$0xff] }
   0x4   :  { %v167_v5 = vld [vmem:[%s3049_s1 + $0x2c8] sm:$0xff]  ;;  %272 = vmatpush.msra.mxu0 %v134_v3  ;;  %498 = vmatpush.msra.mxu2 %v135_v4  ;;  %v170_v9 = vld [vmem:[%s3049_s1 + $0x2e0] sm:$0xff]  ;;  %v168_v43 = vld [vmem:[%s3049_s1 + $0x2d0] sm:$0xff] }
   0x5   :  { %v131_v7 = vld [vmem:[%s3049_s1 + $0x1a8] sm:$0xff]  ;;  %619 = vmatpush.msra.mxu3 %v167_v5  ;;  %v126_v10 = vld [vmem:[%s3049_s1 + $0x180] sm:$0xff]  ;;  %392 = vmatpush.msra.mxu1 %v170_v9  ;;  %v1692_v45 = vld [vmem:[%s3050_s0 + $0x18] sm:$0xff] }
   0x6   :  { %v163_v8 = vld [vmem:[%s3049_s1 + $0x2a8] sm:$0xff]  ;;  %v166_v12 = vld [vmem:[%s3049_s1 + $0x2c0] sm:$0xff]  ;;  %273 = vmatpush.msra.mxu0 %v130_v6  ;;  %499 = vmatpush.msra.mxu2 %v131_v7  ;;  %v132_v48 = vld [vmem:[%s3049_s1 + $0x1b0] sm:$0xff] }
   0x7   :  { %v127_v11 = vld [vmem:[%s3049_s1 + $0x188] sm:$0xff]  ;;  %620 = vmatpush.msra.mxu3 %v163_v8  ;;  %v122_v14 = vld [vmem:[%s3049_s1 + $0x160] sm:$0xff]  ;;  %393 = vmatpush.msra.mxu1 %v166_v12  ;;  %v1738_v57 = vld [vmem:[%s3049_s1 + $0x2f8] sm:$0xff] }
   0x8   :  { %v159_v13 = vld [vmem:[%s3049_s1 + $0x288] sm:$0xff]  ;;  %v162_v16 = vld [vmem:[%s3049_s1 + $0x2a0] sm:$0xff]  ;;  %274 = vmatpush.msra.mxu0 %v126_v10  ;;  %500 = vmatpush.msra.mxu2 %v127_v11  ;;  %v1743_v58 = vld [vmem:[%s3049_s1 + $0x1f8] sm:$0xff] }
   0x9   :  { %v123_v15 = vld [vmem:[%s3049_s1 + $0x168] sm:$0xff]  ;;  %v158_v18 = vld [vmem:[%s3049_s1 + $0x280] sm:$0xff]  ;;  %621 = vmatpush.msra.mxu3 %v159_v13  ;;  %394 = vmatpush.msra.mxu1 %v162_v16  ;;  %v1752_v59 = vld [vmem:[%s3049_s1 + $0x1d8] sm:$0xff] }
   0xa   :  { %v155_v17 = vld [vmem:[%s3049_s1 + $0x268] sm:$0xff]  ;;  %v118_v19 = vld [vmem:[%s3049_s1 + $0x140] sm:$0xff]  ;;  %275 = vmatpush.msra.mxu0 %v122_v14  ;;  %501 = vmatpush.msra.mxu2 %v123_v15  ;;  %v1759_v60 = vld [vmem:[%s3049_s1 + $0x2d8] sm:$0xff] }
   0xb   :  { %v119_v20 = vld [vmem:[%s3049_s1 + $0x148] sm:$0xff]  ;;  %v154_v22 = vld [vmem:[%s3049_s1 + $0x260] sm:$0xff]  ;;  %622 = vmatpush.msra.mxu3 %v155_v17  ;;  %395 = vmatpush.msra.mxu1 %v158_v18  ;;  %v128_v61 = vld [vmem:[%s3049_s1 + $0x190] sm:$0xff] }
   0xc   :  { %v151_v21 = vld [vmem:[%s3049_s1 + $0x248] sm:$0xff]  ;;  %v114_v23 = vld [vmem:[%s3049_s1 + $0x120] sm:$0xff]  ;;  %276 = vmatpush.msra.mxu0 %v118_v19  ;;  %502 = vmatpush.msra.mxu2 %v119_v20  ;;  %v1770_v62 = vld [vmem:[%s3049_s1 + $0x1b8] sm:$0xff] }
   0xd   :  { %v115_v24 = vld [vmem:[%s3049_s1 + $0x128] sm:$0xff]  ;;  %v150_v26 = vld [vmem:[%s3049_s1 + $0x240] sm:$0xff]  ;;  %623 = vmatpush.msra.mxu3 %v151_v21  ;;  %396 = vmatpush.msra.mxu1 %v154_v22  ;;  %v1775_v63 = vld [vmem:[%s3050_s0 + $0x10] sm:$0xff] }
   0xe   :  { %v147_v25 = vld [vmem:[%s3049_s1 + $0x228] sm:$0xff]  ;;  %v110_v27 = vld [vmem:[%s3049_s1 + $0x100] sm:$0xff]  ;;  %277 = vmatpush.msra.mxu0 %v114_v23  ;;  %503 = vmatpush.msra.mxu2 %v115_v24  ;;  %v1781_v0 = vld [vmem:[%s3050_s0 + $0x38] sm:$0xff] }
   0xf   :  { %v111_v28 = vld [vmem:[%s3049_s1 + $0x108] sm:$0xff]  ;;  %v146_v30 = vld [vmem:[%s3049_s1 + $0x220] sm:$0xff]  ;;  %624 = vmatpush.msra.mxu3 %v147_v25  ;;  %397 = vmatpush.msra.mxu1 %v150_v26  ;;  %v164_v3 = vld [vmem:[%s3049_s1 + $0x2b0] sm:$0xff] }
  0x10   :  { %v143_v29 = vld [vmem:[%s3049_s1 + $0x208] sm:$0xff]  ;;  %v106_v32 = vld [vmem:[%s3049_s1 + $0xe0] sm:$0xff]  ;;  %278 = vmatpush.msra.mxu0 %v110_v27  ;;  %504 = vmatpush.msra.mxu2 %v111_v28  ;;  %v124_v4 = vld [vmem:[%s3049_s1 + $0x170] sm:$0xff] }
  0x11   :  { %v1644_v31 = vld [vmem:[%s3050_s0 + $0x8] sm:$0xff]  ;;  %625 = vmatpush.msra.mxu3 %v143_v29  ;;  %v102_v35 = vld [vmem:[%s3049_s1 + $0xc0] sm:$0xff]  ;;  %398 = vmatpush.msra.mxu1 %v146_v30  ;;  %v1815_v5 = vld [vmem:[%s3049_s1 + $0x198] sm:$0xff] }
  0x12   :  { %v107_v34 = vld [vmem:[%s3049_s1 + $0xe8] sm:$0xff]  ;;  %v142_v36 = vld [vmem:[%s3049_s1 + $0x200] sm:$0xff]  ;;  %1407 = vmatmul.msk.f32.vlgmr.msra.gmra.mxu3 %vm174_vm0, %v1644_v31  ;;  %279 = vmatpush.msra.mxu0 %v106_v32  ;;  %v1820_v6 = vld [vmem:[%s3050_s0 + $0x30] sm:$0xff] }
  0x13   :  { %v103_v37 = vld [vmem:[%s3049_s1 + $0xc8] sm:$0xff]  ;;  %844 = vmatpush.msrb.mxu3 %v172_v33  ;;  %505 = vmatpush.msra.mxu2 %v107_v34  ;;  %v98_v38 = vld [vmem:[%s3049_s1 + $0xa0] sm:$0xff]  ;;  %v1826_v7 = vld [vmem:[%s3050_s0 + $0x58] sm:$0xff] }
  0x14   :  { %280 = vmatpush.msra.mxu0 %v102_v35  ;;  %399 = vmatpush.msra.mxu1 %v142_v36  ;;  %v99_v40 = vld [vmem:[%s3049_s1 + $0xa8] sm:$0xff]  ;;  %v94_v41 = vld [vmem:[%s3049_s1 + $0x80] sm:$0xff]  ;;  %v1851_v10 = vld [vmem:[%s3049_s1 + $0x2b8] sm:$0xff] }
  0x15   :  { %506 = vmatpush.msra.mxu2 %v103_v37  ;;  %1375 = vmatmul.msk.f32.vlgmr.msra.gmra.mxu1 %vm174_vm0, %v1644_v31  ;;  %v95_v44 = vld [vmem:[%s3049_s1 + $0x88] sm:$0xff]  ;;  %v90_v46 = vld [vmem:[%s3049_s1 + $0x60] sm:$0xff]  ;;  %v120_v11 = vld [vmem:[%s3049_s1 + $0x150] sm:$0xff] }
  0x16   :  { %281 = vmatpush.msra.mxu0 %v98_v38  ;;  %723 = vmatpush.msrb.mxu1 %v140_v39  ;;  %v91_v47 = vld [vmem:[%s3049_s1 + $0x68] sm:$0xff]  ;;  %v86_v49 = vld [vmem:[%s3049_s1 + $0x40] sm:$0xff]  ;;  %v1862_v12 = vld [vmem:[%s3049_s1 + $0x178] sm:$0xff] }
  0x17   :  { %507 = vmatpush.msra.mxu2 %v99_v40  ;;  %845 = vmatpush.msrb.mxu3 %v168_v43  ;;  %v87_v50 = vld [vmem:[%s3049_s1 + $0x48] sm:$0xff]  ;;  %v82_v51 = vld [vmem:[%s3049_s1 + $0x20] sm:$0xff]  ;;  %v1867_v13 = vld [vmem:[%s3050_s0 + $0x50] sm:$0xff] }
  0x18   :  { %282 = vmatpush.msra.mxu0 %v94_v41  ;;  %724 = vmatpush.msrb.mxu1 %v136_v42  ;;  %v83_v52 = vld [vmem:[%s3049_s1 + $0x28] sm:$0xff]  ;;  %v78_v53 = vld [vmem:[%s3049_s1] sm:$0xff]  ;;  %v1873_v14 = vld [vmem:[%s3050_s0 + $0x78] sm:$0xff] }
  0x19   :  { %508 = vmatpush.msra.mxu2 %v95_v44  ;;  %v79_v54 = vld [vmem:[%s3049_s1 + $0x8] sm:$0xff]  ;;  %v1728_v55 = vld [vmem:[%s3050_s0] sm:$0xff]  ;;  %846 = vmatpush.msrb.mxu3 %v164_v3  ;;  %v160_v17 = vld [vmem:[%s3049_s1 + $0x290] sm:$0xff] }
  0x1a   :  { %1408 = vmatmul.msk.f32.gmra.mxu3 %vm174_vm0, %v1692_v45  ;;  %283 = vmatpush.msra.mxu0 %v90_v46  ;;  %v1733_v56 = vld [vmem:[%s3050_s0 + $0x28] sm:$0xff]  ;;  %v1793_v1 = vld [vmem:[%s3050_s0 + $0x20] sm:$0xff]  ;;  %v116_v18 = vld [vmem:[%s3049_s1 + $0x130] sm:$0xff] }
  0x1b   :  { %509 = vmatpush.msra.mxu2 %v91_v47  ;;  %725 = vmatpush.msrb.mxu1 %v132_v48  ;;  %v1798_v2 = vld [vmem:[%s3050_s0 + $0x48] sm:$0xff]  ;;  %v1837_v8 = vld [vmem:[%s3050_s0 + $0x40] sm:$0xff]  ;;  %v1906_v19 = vld [vmem:[%s3049_s1 + $0x158] sm:$0xff] }
  0x1c   :  { %284 = vmatpush.msra.mxu0 %v86_v49  ;;  %v1842_v9 = vld [vmem:[%s3050_s0 + $0x68] sm:$0xff]  ;;  %v1884_v15 = vld [vmem:[%s3050_s0 + $0x60] sm:$0xff]  ;;  %847 = vmatpush.msrb.mxu3 %v160_v17  ;;  %v1911_v20 = vld [vmem:[%s3050_s0 + $0x70] sm:$0xff] }
  0x1d   :  { %510 = vmatpush.msra.mxu2 %v87_v50  ;;  %1376 = vmatmul.msk.f32.gmra.mxu1 %vm174_vm0, %v1692_v45  ;;  %v1889_v16 = vld [vmem:[%s3050_s0 + $0x88] sm:$0xff]  ;;  %v1917_v21 = vld [vmem:[%s3050_s0 + $0x98] sm:$0xff]  ;;  %v1928_v22 = vld [vmem:[%s3050_s0 + $0x80] sm:$0xff] }
  0x1e   :  { %285 = vmatpush.msra.mxu0 %v82_v51  ;;  %726 = vmatpush.msrb.mxu1 %v128_v61  ;;  %v1933_v23 = vld [vmem:[%s3050_s0 + $0xa8] sm:$0xff]  ;;  %v1942_v24 = vld [vmem:[%s3049_s1 + $0x298] sm:$0xff]  ;;  %v112_v25 = vld [vmem:[%s3049_s1 + $0x110] sm:$0xff] }
  0x1f   :  { %511 = vmatpush.msra.mxu2 %v83_v52  ;;  %v1953_v26 = vld [vmem:[%s3049_s1 + $0x138] sm:$0xff]  ;;  %v1958_v27 = vld [vmem:[%s3050_s0 + $0x90] sm:$0xff]  ;;  %v1975_v29 = vld [vmem:[%s3050_s0 + $0xa0] sm:$0xff] }
  0x20   :  { %286 = vmatpush.msra.mxu0 %v78_v53  ;;  %727 = vmatpush.msrb.mxu1 %v124_v4  ;;  %v1964_v28 = vld [vmem:[%s3050_s0 + $0xb8] sm:$0xff]  ;;  %v1980_v30 = vld [vmem:[%s3050_s0 + $0xc8] sm:$0xff]  ;;  %v156_v32 = vld [vmem:[%s3049_s1 + $0x270] sm:$0xff] }
  0x21   :  { %512 = vmatpush.msra.mxu2 %v79_v54  ;;  %287 = vmatmul.f32.vlgmr.msra.gmra.mxu0 %v1728_v55  ;;  %v108_v33 = vld [vmem:[%s3049_s1 + $0xf0] sm:$0xff]  ;;  %v1997_v34 = vld [vmem:[%s3049_s1 + $0x118] sm:$0xff]  ;;  %v2019_v37 = vld [vmem:[%s3050_s0 + $0xc0] sm:$0xff] }
  0x22   :  { %513 = vmatmul.f32.vlgmr.msra.gmra.mxu2 %v1728_v55  ;;  %1409 = vmatmul.msk.f32.gmra.mxu3 %vm174_vm0, %v1733_v56  ;;  %v2002_v35 = vld [vmem:[%s3050_s0 + $0xb0] sm:$0xff]  ;;  %v2008_v36 = vld [vmem:[%s3050_s0 + $0xd8] sm:$0xff]  ;;  %v2024_v38 = vld [vmem:[%s3050_s0 + $0xe8] sm:$0xff] }
  0x23   :  { %1070 = vmatpush.msrb.mxu2 %v1738_v57  ;;  %949 = vmatpush.msrb.mxu0 %v1743_v58  ;;  %v2033_v39 = vld [vmem:[%s3049_s1 + $0x278] sm:$0xff]  ;;  %v2041_v40 = vld [vmem:[%s3050_s0 + $0xd0] sm:$0xff]  ;;  %v2066_v44 = vld [vmem:[%s3050_s0 + $0xe0] sm:$0xff] }
  0x24   :  { %728 = vmatpush.msrb.mxu1 %v120_v11  ;;  %848 = vmatpush.msrb.mxu3 %v156_v32  ;;  %v2046_v41 = vld [vmem:[%s3050_s0 + $0xf8] sm:$0xff]  ;;  %v104_v42 = vld [vmem:[%s3049_s1 + $0xd0] sm:$0xff]  ;;  %3136 = vst [vmem:[#allocation3_spill] sm:$0xff] %v2066_v44  ;;  %v2071_v46 = vld [vmem:[%s3050_s0 + $0x108] sm:$0xff] }
  0x25   :  { %1377 = vmatmul.msk.f32.gmra.mxu1 %vm174_vm0, %v1733_v56  ;;  %950 = vmatpush.msrb.mxu0 %v1752_v59  ;;  %3135 = vst [vmem:[#allocation2_spill] sm:$0xff] %v2046_v41  ;;  %v2054_v43 = vld [vmem:[%s3049_s1 + $0xf8] sm:$0xff]  ;;  %v152_v48 = vld [vmem:[%s3049_s1 + $0x250] sm:$0xff]  ;;  %v2110_v4 = vld [vmem:[%s3050_s0 + $0x100] sm:$0xff] }
  0x26   :  { %1071 = vmatpush.msrb.mxu2 %v1759_v60  ;;  %729 = vmatpush.msrb.mxu1 %v116_v18  ;;  %3137 = vst [vmem:[#allocation4_spill] sm:$0xff] %v2071_v46  ;;  %v2085_v50 = vld [vmem:[%s3050_s0 + $0xf0] sm:$0xff]  ;;  %v2090_v51 = vld [vmem:[%s3050_s0 + $0x118] sm:$0xff]  ;;  %v2115_v11 = vld [vmem:[%s3050_s0 + $0x128] sm:$0xff] }
  0x27   :  { %951 = vmatpush.msrb.mxu0 %v1770_v62  ;;  %849 = vmatpush.msrb.mxu3 %v152_v48  ;;  %3138 = vst [vmem:[#allocation5_spill] sm:$0xff] %v2085_v50  ;;  %v100_v52 = vld [vmem:[%s3049_s1 + $0xb0] sm:$0xff]  ;;  %v2098_v53 = vld [vmem:[%s3049_s1 + $0xd8] sm:$0xff] }
  0x28   :  { %1072 = vmatpush.msrb.mxu2 %v1851_v10  ;;  %730 = vmatpush.msrb.mxu1 %v112_v25  ;;  %3139 = vst [vmem:[#allocation6_spill] sm:$0xff] %v2090_v51  ;;  %v2124_v18 = vld [vmem:[%s3049_s1 + $0x258] sm:$0xff] }
  0x29   :  { %290 = vmatmul.f32.gmra.mxu0 %v1775_v63  ;;  %3140 = vst [vmem:[#allocation7_spill] sm:$0xff] %v2110_v4 }
  0x2a   :  { %516 = vmatmul.f32.gmra.mxu2 %v1775_v63  ;;  %1410 = vmatmul.msk.f32.gmra.mxu3 %vm174_vm0, %v1781_v0  ;;  %3141 = vst [vmem:[#allocation8_spill] sm:$0xff] %v2115_v11 }
  0x2b   :  { %952 = vmatpush.msrb.mxu0 %v1815_v5  ;;  %1073 = vmatpush.msrb.mxu2 %v1942_v24 }
  0x2c   :  { %731 = vmatpush.msrb.mxu1 %v108_v33 }
  0x2d   :  { %1378 = vmatmul.msk.f32.gmra.mxu1 %vm174_vm0, %v1781_v0  ;;  %953 = vmatpush.msrb.mxu0 %v1862_v12 }
  0x2e   :  { %1074 = vmatpush.msrb.mxu2 %v2033_v39  ;;  %732 = vmatpush.msrb.mxu1 %v104_v42 }
  0x2f   :  { %954 = vmatpush.msrb.mxu0 %v1906_v19 }
  0x30   :  { %733 = vmatpush.msrb.mxu1 %v100_v52  ;;  %1075 = vmatpush.msrb.mxu2 %v2124_v18  ;;  %v2136_v52 = vld [vmem:[%s3050_s0 + $0x110] sm:$0xff] }
  0x31   :  { %293 = vmatmul.f32.gmra.mxu0 %v1793_v1  ;;  %3144 = vst [vmem:[#allocation11_spill] sm:$0xff] %v2136_v52 }
  0x32   :  { %519 = vmatmul.f32.gmra.mxu2 %v1793_v1  ;;  %1411 = vmatmul.msk.f32.gmra.mxu3 %vm174_vm0, %v1798_v2 }
  0x33   :  { %955 = vmatpush.msrb.mxu0 %v1953_v26 }
  0x35   :  { %1379 = vmatmul.msk.f32.gmra.mxu1 %vm174_vm0, %v1798_v2  ;;  %956 = vmatpush.msrb.mxu0 %v1997_v34 }
  0x37   :  { %957 = vmatpush.msrb.mxu0 %v2054_v43 }
  0x39   :  { %296 = vmatmul.f32.gmra.mxu0 %v1820_v6 }
  0x3a   :  { %522 = vmatmul.f32.gmra.mxu2 %v1820_v6  ;;  %1412 = vmatmul.msk.f32.gmra.mxu3 %vm174_vm0, %v1826_v7 }
  0x3b   :  { %958 = vmatpush.msrb.mxu0 %v2098_v53 }
  0x3d   :  { %1380 = vmatmul.msk.f32.gmra.mxu1 %vm174_vm0, %v1826_v7 }
  0x41   :  { %299 = vmatmul.f32.gmra.mxu0 %v1837_v8 }
  0x42   :  { %525 = vmatmul.f32.gmra.mxu2 %v1837_v8  ;;  %1413 = vmatmul.msk.f32.gmra.mxu3 %vm174_vm0, %v1842_v9 }
  0x45   :  { %1381 = vmatmul.msk.f32.gmra.mxu1 %vm174_vm0, %v1842_v9 }
  0x49   :  { %302 = vmatmul.f32.gmra.mxu0 %v1867_v13 }
  0x4a   :  { %528 = vmatmul.f32.gmra.mxu2 %v1867_v13  ;;  %1414 = vmatmul.msk.f32.gmra.mxu3 %vm174_vm0, %v1873_v14 }
  0x4d   :  { %1382 = vmatmul.msk.f32.gmra.mxu1 %vm174_vm0, %v1873_v14 }
  0x51   :  { %305 = vmatmul.f32.gmra.mxu0 %v1884_v15 }
  0x52   :  { %531 = vmatmul.f32.gmra.mxu2 %v1884_v15  ;;  %1415 = vmatmul.msk.f32.gmra.mxu3 %vm174_vm0, %v1889_v16 }
  0x55   :  { %1383 = vmatmul.msk.f32.gmra.mxu1 %vm174_vm0, %v1889_v16 }
  0x59   :  { %308 = vmatmul.f32.gmra.mxu0 %v1911_v20 }
  0x5a   :  { %534 = vmatmul.f32.gmra.mxu2 %v1911_v20  ;;  %1416 = vmatmul.msk.f32.gmra.mxu3 %vm174_vm0, %v1917_v21 }
  0x5d   :  { %1384 = vmatmul.msk.f32.gmra.mxu1 %vm174_vm0, %v1917_v21 }
  0x61   :  { %311 = vmatmul.f32.gmra.mxu0 %v1928_v22 }
  0x62   :  { %537 = vmatmul.f32.gmra.mxu2 %v1928_v22  ;;  %1417 = vmatmul.msk.f32.gmra.mxu3 %vm174_vm0, %v1933_v23 }
  0x65   :  { %1385 = vmatmul.msk.f32.gmra.mxu1 %vm174_vm0, %v1933_v23 }
  0x69   :  { %314 = vmatmul.f32.gmra.mxu0 %v1958_v27 }
  0x6a   :  { %540 = vmatmul.f32.gmra.mxu2 %v1958_v27  ;;  %1418 = vmatmul.msk.f32.gmra.mxu3 %vm174_vm0, %v1964_v28 }
  0x6d   :  { %1386 = vmatmul.msk.f32.gmra.mxu1 %vm174_vm0, %v1964_v28 }
  0x71   :  { %317 = vmatmul.f32.gmra.mxu0 %v1975_v29 }
  0x72   :  { %543 = vmatmul.f32.gmra.mxu2 %v1975_v29  ;;  %1419 = vmatmul.msk.f32.gmra.mxu3 %vm174_vm0, %v1980_v30 }
  0x75   :  { %1387 = vmatmul.msk.f32.gmra.mxu1 %vm174_vm0, %v1980_v30 }
  0x79   :  { %320 = vmatmul.f32.gmra.mxu0 %v2002_v35 }
  0x7a   :  { %546 = vmatmul.f32.gmra.mxu2 %v2002_v35  ;;  %1420 = vmatmul.msk.f32.gmra.mxu3 %vm174_vm0, %v2008_v36 }
  0x7d   :  { %1388 = vmatmul.msk.f32.gmra.mxu1 %vm174_vm0, %v2008_v36 }
  0x81   :  { %323 = vmatmul.f32.gmra.mxu0 %v2019_v37 }
  0x82   :  { %549 = vmatmul.f32.gmra.mxu2 %v2019_v37  ;;  %1421 = vmatmul.msk.f32.gmra.mxu3 %vm174_vm0, %v2024_v38 }
  0x85   :  { %1389 = vmatmul.msk.f32.gmra.mxu1 %vm174_vm0, %v2024_v38 }
  0x89   :  { %326 = vmatmul.f32.gmra.mxu0 %v2041_v40 }
  0x8a   :  { %552 = vmatmul.f32.gmra.mxu2 %v2041_v40  ;;  %1422 = vmatmul.msk.f32.gmra.mxu3 %vm174_vm0, %v2046_v41 }
  0x8d   :  { %1390 = vmatmul.msk.f32.gmra.mxu1 %vm174_vm0, %v2046_v41 }
  0x91   :  { %329 = vmatmul.f32.gmra.mxu0 %v2066_v44 }
  0x92   :  { %555 = vmatmul.f32.gmra.mxu2 %v2066_v44  ;;  %1423 = vmatmul.msk.f32.gmra.mxu3 %vm174_vm0, %v2071_v46  ;;  %v401_v47 = vpop.f32.mrf.mxu1 }
  0x95   :  { %v627_v49 = vpop.f32.mrf.mxu3  ;;  %1391 = vmatmul.msk.f32.gmra.mxu1 %vm174_vm0, %v2071_v46 }
  0x99   :  { %332 = vmatmul.f32.gmra.mxu0 %v2085_v50 }
  0x9a   :  { %558 = vmatmul.f32.gmra.mxu2 %v2085_v50  ;;  %1424 = vmatmul.msk.f32.gmra.mxu3 %vm174_vm0, %v2090_v51  ;;  %v404_v54 = vpop.f32.mrf.mxu1 }
  0x9d   :  { %v630_v61 = vpop.f32.mrf.mxu3  ;;  %1392 = vmatmul.msk.f32.gmra.mxu1 %vm174_vm0, %v2090_v51  ;;  %v2141_v51 = vld [vmem:[%s3050_s0 + $0x138] sm:$0xff] }
  0x9e   :  { %v288_v3 = vpop.f32.mrf.mxu0  ;;  %3145 = vst [vmem:[#allocation12_spill] sm:$0xff] %v2141_v51 }
  0x9f   :  { %v2129_v33 = vadd.f32 %v401_v47, %v288_v3  ;;  %v96_v47 = vld [vmem:[%s3049_s1 + $0x90] sm:$0xff] }
  0xa0   :  { %734 = vmatpush.msrb.mxu1 %v96_v47  ;;  %v2167_v47 = vld [vmem:[%s3050_s0 + $0x120] sm:$0xff] }
  0xa1   :  { %335 = vmatmul.f32.gmra.mxu0 %v2110_v4  ;;  %3142 = vst [vmem:[#allocation9_spill] sm:$0xff] %v2129_v33 }
  0xa2   :  { %561 = vmatmul.f32.gmra.mxu2 %v2110_v4  ;;  %1425 = vmatmul.msk.f32.gmra.mxu3 %vm174_vm0, %v2115_v11  ;;  %v407_v17 = vpop.f32.mrf.mxu1  ;;  %3148 = vst [vmem:[#allocation15_spill] sm:$0xff] %v2167_v47 }
  0xa5   :  { %v514_v25 = vpop.f32.mrf.mxu2  ;;  %v633_v32 = vpop.f32.mrf.mxu3  ;;  %1393 = vmatmul.msk.f32.gmra.mxu1 %vm174_vm0, %v2115_v11 }
  0xa6   :  { %v2131_v42 = vadd.f32 %v627_v49, %v514_v25  ;;  %v291_v48 = vpop.f32.mrf.mxu0  ;;  %v2151_v49 = vld [vmem:[%s3049_s1 + $0xb8] sm:$0xff] }
  0xa7   :  { %959 = vmatpush.msrb.mxu0 %v2151_v49 }
  0xa8   :  { %3143 = vst [vmem:[#allocation10_spill] sm:$0xff] %v2131_v42  ;;  %v2160_v42 = vadd.f32 %v404_v54, %v291_v48 }
  0xa9   :  { %338 = vmatmul.f32.gmra.mxu0 %v2136_v52 }
  0xaa   :  { %564 = vmatmul.f32.gmra.mxu2 %v2136_v52  ;;  %1426 = vmatmul.msk.f32.gmra.mxu3 %vm174_vm0, %v2141_v51  ;;  %v410_v3 = vpop.f32.mrf.mxu1  ;;  %3146 = vst [vmem:[#allocation13_spill] sm:$0xff] %v2160_v42  ;;  %v2172_v52 = vld [vmem:[%s3050_s0 + $0x148] sm:$0xff]  ;;  %v2192_v42 = vld [vmem:[%s3050_s0 + $0x130] sm:$0xff] }
  0xab   :  { %3149 = vst [vmem:[#allocation16_spill] sm:$0xff] %v2172_v52 }
  0xac   :  { %3152 = vst [vmem:[#allocation19_spill] sm:$0xff] %v2192_v42 }
  0xad   :  { %v517_v25 = vpop.f32.mrf.mxu2  ;;  %v636_v4 = vpop.f32.mrf.mxu3  ;;  %1394 = vmatmul.msk.f32.gmra.mxu1 %vm174_vm0, %v2141_v51 }
  0xae   :  { %v2162_v33 = vadd.f32 %v630_v61, %v517_v25  ;;  %v294_v11 = vpop.f32.mrf.mxu0  ;;  %v148_v61 = vld [vmem:[%s3049_s1 + $0x230] sm:$0xff] }
  0xaf   :  { %850 = vmatpush.msrb.mxu3 %v148_v61  ;;  %v2185_v51 = vadd.f32 %v407_v17, %v294_v11  ;;  %v92_v11 = vld [vmem:[%s3049_s1 + $0x70] sm:$0xff]  ;;  %v2207_v17 = vld [vmem:[%s3049_s1 + $0x98] sm:$0xff] }
  0xb0   :  { %3147 = vst [vmem:[#allocation14_spill] sm:$0xff] %v2162_v33  ;;  %735 = vmatpush.msrb.mxu1 %v92_v11  ;;  %960 = vmatpush.msrb.mxu0 %v2207_v17  ;;  %v2223_v11 = vld [vmem:[%s3050_s0 + $0x140] sm:$0xff] }
  0xb1   :  { %341 = vmatmul.f32.gmra.mxu0 %v2167_v47  ;;  %3150 = vst [vmem:[#allocation17_spill] sm:$0xff] %v2185_v51 }
  0xb2   :  { %567 = vmatmul.f32.gmra.mxu2 %v2167_v47  ;;  %1427 = vmatmul.msk.f32.gmra.mxu3 %vm174_vm0, %v2172_v52  ;;  %v413_v54 = vpop.f32.mrf.mxu1  ;;  %v2197_v47 = vld [vmem:[%s3050_s0 + $0x158] sm:$0xff]  ;;  %3156 = vst [vmem:[#allocation23_spill] sm:$0xff] %v2223_v11 }
  0xb3   :  { %3153 = vst [vmem:[#allocation20_spill] sm:$0xff] %v2197_v47 }
  0xb5   :  { %v520_v48 = vpop.f32.mrf.mxu2  ;;  %v639_v25 = vpop.f32.mrf.mxu3  ;;  %1395 = vmatmul.msk.f32.gmra.mxu1 %vm174_vm0, %v2172_v52 }
  0xb6   :  { %v2187_v46 = vadd.f32 %v633_v32, %v520_v48  ;;  %v297_v33 = vpop.f32.mrf.mxu0 }
  0xb8   :  { %3151 = vst [vmem:[#allocation18_spill] sm:$0xff] %v2187_v46  ;;  %v2216_v46 = vadd.f32 %v410_v3, %v297_v33  ;;  %v2239_v33 = vld [vmem:[%s3049_s1 + $0x238] sm:$0xff] }
  0xb9   :  { %344 = vmatmul.f32.gmra.mxu0 %v2192_v42  ;;  %1076 = vmatpush.msrb.mxu2 %v2239_v33 }
  0xba   :  { %570 = vmatmul.f32.gmra.mxu2 %v2192_v42  ;;  %1428 = vmatmul.msk.f32.gmra.mxu3 %vm174_vm0, %v2197_v47  ;;  %v416_v32 = vpop.f32.mrf.mxu1  ;;  %3154 = vst [vmem:[#allocation21_spill] sm:$0xff] %v2216_v46  ;;  %v2228_v42 = vld [vmem:[%s3050_s0 + $0x168] sm:$0xff] }
  0xbb   :  { %3157 = vst [vmem:[#allocation24_spill] sm:$0xff] %v2228_v42 }
  0xbd   :  { %v523_v48 = vpop.f32.mrf.mxu2  ;;  %v642_v61 = vpop.f32.mrf.mxu3  ;;  %1396 = vmatmul.msk.f32.gmra.mxu1 %vm174_vm0, %v2197_v47  ;;  %v2251_v47 = vld [vmem:[%s3050_s0 + $0x150] sm:$0xff] }
  0xbe   :  { %v2218_v51 = vadd.f32 %v636_v4, %v523_v48  ;;  %v300_v52 = vpop.f32.mrf.mxu0  ;;  %3160 = vst [vmem:[#allocation27_spill] sm:$0xff] %v2251_v47 }
  0xbf   :  { %v2244_v50 = vadd.f32 %v413_v54, %v300_v52  ;;  %v88_v52 = vld [vmem:[%s3049_s1 + $0x50] sm:$0xff]  ;;  %v2266_v54 = vld [vmem:[%s3049_s1 + $0x78] sm:$0xff] }
  0xc0   :  { %3155 = vst [vmem:[#allocation22_spill] sm:$0xff] %v2218_v51  ;;  %736 = vmatpush.msrb.mxu1 %v88_v52  ;;  %961 = vmatpush.msrb.mxu0 %v2266_v54  ;;  %v2282_v52 = vld [vmem:[%s3050_s0 + $0x160] sm:$0xff] }
  0xc1   :  { %347 = vmatmul.f32.gmra.mxu0 %v2223_v11  ;;  %3158 = vst [vmem:[#allocation25_spill] sm:$0xff] %v2244_v50 }
  0xc2   :  { %573 = vmatmul.f32.gmra.mxu2 %v2223_v11  ;;  %1429 = vmatmul.msk.f32.gmra.mxu3 %vm174_vm0, %v2228_v42  ;;  %v419_v4 = vpop.f32.mrf.mxu1  ;;  %v2256_v11 = vld [vmem:[%s3050_s0 + $0x178] sm:$0xff] }
  0xc3   :  { %3161 = vst [vmem:[#allocation28_spill] sm:$0xff] %v2256_v11 }
  0xc5   :  { %v526_v3 = vpop.f32.mrf.mxu2  ;;  %v645_v48 = vpop.f32.mrf.mxu3  ;;  %1397 = vmatmul.msk.f32.gmra.mxu1 %vm174_vm0, %v2228_v42 }
  0xc6   :  { %v2246_v51 = vadd.f32 %v639_v25, %v526_v3  ;;  %v303_v46 = vpop.f32.mrf.mxu0 }
  0xc8   :  { %3159 = vst [vmem:[#allocation26_spill] sm:$0xff] %v2246_v51  ;;  %v2275_v51 = vadd.f32 %v416_v32, %v303_v46 }
  0xc9   :  { %350 = vmatmul.f32.gmra.mxu0 %v2251_v47 }
  0xca   :  { %576 = vmatmul.f32.gmra.mxu2 %v2251_v47  ;;  %1430 = vmatmul.msk.f32.gmra.mxu3 %vm174_vm0, %v2256_v11  ;;  %v422_v25 = vpop.f32.mrf.mxu1  ;;  %3162 = vst [vmem:[#allocation29_spill] sm:$0xff] %v2275_v51  ;;  %v2287_v47 = vld [vmem:[%s3050_s0 + $0x188] sm:$0xff] }
  0xcd   :  { %v529_v3 = vpop.f32.mrf.mxu2  ;;  %v648_v41 = vpop.f32.mrf.mxu3  ;;  %1398 = vmatmul.msk.f32.gmra.mxu1 %vm174_vm0, %v2256_v11  ;;  %v2308_v11 = vld [vmem:[%s3050_s0 + $0x170] sm:$0xff] }
  0xce   :  { %v2277_v50 = vadd.f32 %v642_v61, %v529_v3  ;;  %v306_v42 = vpop.f32.mrf.mxu0  ;;  %v144_v61 = vld [vmem:[%s3049_s1 + $0x210] sm:$0xff] }
  0xcf   :  { %851 = vmatpush.msrb.mxu3 %v144_v61  ;;  %v2301_v44 = vadd.f32 %v419_v4, %v306_v42  ;;  %v84_v42 = vld [vmem:[%s3049_s1 + $0x30] sm:$0xff]  ;;  %v2324_v4 = vld [vmem:[%s3049_s1 + $0x58] sm:$0xff] }
  0xd0   :  { %3163 = vst [vmem:[#allocation30_spill] sm:$0xff] %v2277_v50  ;;  %737 = vmatpush.msrb.mxu1 %v84_v42  ;;  %962 = vmatpush.msrb.mxu0 %v2324_v4 }
  0xd1   :  { %353 = vmatmul.f32.gmra.mxu0 %v2282_v52  ;;  %1519 = vmatpush.msra.mxu3 %v1738_v57  ;;  %v2314_v57 = vld [vmem:[%s3050_s0 + $0x198] sm:$0xff] }
  0xd2   :  { %579 = vmatmul.f32.gmra.mxu2 %v2282_v52  ;;  %1431 = vmatmul.msk.f32.gmra.mxu3 %vm174_vm0, %v2287_v47  ;;  %v425_v46 = vpop.f32.mrf.mxu1 }
  0xd3   :  { %1520 = vmatpush.msra.mxu3 %v1759_v60 }
  0xd5   :  { %v532_v32 = vpop.f32.mrf.mxu2  ;;  %v651_v3 = vpop.f32.mrf.mxu3  ;;  %1399 = vmatmul.msk.f32.gmra.mxu1 %vm174_vm0, %v2287_v47  ;;  %1521 = vmatpush.msra.mxu3 %v1851_v10 }
  0xd6   :  { %v2303_v50 = vadd.f32 %v645_v48, %v532_v32  ;;  %v309_v51 = vpop.f32.mrf.mxu0 }
  0xd7   :  { %1522 = vmatpush.msra.mxu3 %v1942_v24  ;;  %v2336_v10 = vadd.f32 %v422_v25, %v309_v51  ;;  %v2348_v24 = vld [vmem:[%s3050_s0 + $0x1a8] sm:$0xff]  ;;  %v145_v51 = vld [vmem:[%s3049_s1 + $0x218] sm:$0xff] }
  0xd8   :  { %3164 = vst [vmem:[#allocation31_spill] sm:$0xff] %v2303_v50  ;;  %v2343_v50 = vld [vmem:[%s3050_s0 + $0x180] sm:$0xff]  ;;  %1077 = vmatpush.msrb.mxu2 %v145_v51 }
  0xd9   :  { %356 = vmatmul.f32.gmra.mxu0 %v2308_v11  ;;  %1523 = vmatpush.msra.mxu3 %v2033_v39  ;;  %3165 = vst [vmem:[#allocation32_spill] sm:$0xff] %v2336_v10  ;;  %v2375_v10 = vld [vmem:[%s3050_s0 + $0x1b8] sm:$0xff] }
  0xda   :  { %582 = vmatmul.f32.gmra.mxu2 %v2308_v11  ;;  %1432 = vmatmul.msk.f32.gmra.mxu3 %vm174_vm0, %v2314_v57  ;;  %v428_v60 = vpop.f32.mrf.mxu1  ;;  %3167 = vst [vmem:[#allocation34_spill] sm:$0xff] %v2348_v24 }
  0xdb   :  { %1524 = vmatpush.msra.mxu3 %v2124_v18  ;;  %3170 = vst [vmem:[#allocation37_spill] sm:$0xff] %v2375_v10 }
  0xdd   :  { %v535_v48 = vpop.f32.mrf.mxu2  ;;  %v654_v32 = vpop.f32.mrf.mxu3  ;;  %1400 = vmatmul.msk.f32.gmra.mxu1 %vm174_vm0, %v2314_v57  ;;  %1525 = vmatpush.msra.mxu3 %v2239_v33 }
  0xde   :  { %v2338_v42 = vadd.f32 %v648_v41, %v535_v48  ;;  %v312_v61 = vpop.f32.mrf.mxu0 }
  0xdf   :  { %1526 = vmatpush.msra.mxu3 %v145_v51  ;;  %v2363_v48 = vadd.f32 %v425_v46, %v312_v61  ;;  %v80_v46 = vld [vmem:[%s3049_s1 + $0x10] sm:$0xff] }
  0xe0   :  { %3166 = vst [vmem:[#allocation33_spill] sm:$0xff] %v2338_v42  ;;  %v2370_v42 = vld [vmem:[%s3050_s0 + $0x190] sm:$0xff]  ;;  %738 = vmatpush.msrb.mxu1 %v80_v46 }
  0xe1   :  { %359 = vmatmul.f32.gmra.mxu0 %v2343_v50  ;;  %3168 = vst [vmem:[#allocation35_spill] sm:$0xff] %v2363_v48 }
  0xe2   :  { %585 = vmatmul.f32.gmra.mxu2 %v2343_v50  ;;  %1433 = vmatmul.msk.f32.gmra.mxu3 %vm174_vm0, %v2348_v24  ;;  %v431_v41 = vpop.f32.mrf.mxu1 }
  0xe3   :  { %1503 = vmatpush.msra.mxu1 %v1743_v58  ;;  %v2408_v58 = vld [vmem:[%s3050_s0 + $0x1c8] sm:$0xff] }
  0xe4   :  { %3171 = vst [vmem:[#allocation38_spill] sm:$0xff] %v2408_v58 }
  0xe5   :  { %v538_v18 = vpop.f32.mrf.mxu2  ;;  %v657_v25 = vpop.f32.mrf.mxu3  ;;  %1401 = vmatmul.msk.f32.gmra.mxu1 %vm174_vm0, %v2348_v24  ;;  %v2402_v24 = vld [vmem:[%s3050_s0 + $0x1a0] sm:$0xff] }
  0xe6   :  { %v2365_v33 = vadd.f32 %v651_v3, %v538_v18  ;;  %v315_v39 = vpop.f32.mrf.mxu0  ;;  %v2385_v3 = vld [vmem:[%s3049_s1 + $0x38] sm:$0xff]  ;;  %1504 = vmatpush.msra.mxu1 %v1752_v59 }
  0xe7   :  { %963 = vmatpush.msrb.mxu0 %v2385_v3 }
  0xe8   :  { %3169 = vst [vmem:[#allocation36_spill] sm:$0xff] %v2365_v33  ;;  %v2395_v33 = vadd.f32 %v428_v60, %v315_v39  ;;  %1505 = vmatpush.msra.mxu1 %v1770_v62 }
  0xe9   :  { %362 = vmatmul.f32.gmra.mxu0 %v2370_v42 }
  0xea   :  { %588 = vmatmul.f32.gmra.mxu2 %v2370_v42  ;;  %1434 = vmatmul.msk.f32.gmra.mxu3 %vm174_vm0, %v2375_v10  ;;  %v434_v61 = vpop.f32.mrf.mxu1 }
  0xeb   :  { %1506 = vmatpush.msra.mxu1 %v1815_v5  ;;  %v2433_v5 = vld [vmem:[%s3050_s0 + $0x1d8] sm:$0xff] }
  0xec   :  { %3173 = vst [vmem:[#allocation40_spill] sm:$0xff] %v2433_v5 }
  0xed   :  { %v541_v18 = vpop.f32.mrf.mxu2  ;;  %v660_v51 = vpop.f32.mrf.mxu3  ;;  %1402 = vmatmul.msk.f32.gmra.mxu1 %vm174_vm0, %v2375_v10  ;;  %v2427_v10 = vld [vmem:[%s3050_s0 + $0x1b0] sm:$0xff] }
  0xee   :  { %v2397_v48 = vadd.f32 %v654_v32, %v541_v18  ;;  %v318_v46 = vpop.f32.mrf.mxu0  ;;  %1507 = vmatpush.msra.mxu1 %v1862_v12 }
  0xef   :  { %v2420_v39 = vadd.f32 %v431_v41, %v318_v46  ;;  %v81_v41 = vld [vmem:[%s3049_s1 + $0x18] sm:$0xff] }
  0xf0   :  { %1508 = vmatpush.msra.mxu1 %v1906_v19  ;;  %964 = vmatpush.msrb.mxu0 %v81_v41 }
  0xf1   :  { %365 = vmatmul.f32.gmra.mxu0 %v2402_v24 }
  0xf2   :  { %591 = vmatmul.f32.gmra.mxu2 %v2402_v24  ;;  %1435 = vmatmul.msk.f32.gmra.mxu3 %vm174_vm0, %v2408_v58  ;;  %v437_v60 = vpop.f32.mrf.mxu1 }
  0xf3   :  { %1509 = vmatpush.msra.mxu1 %v1953_v26  ;;  %v2461_v26 = vld [vmem:[%s3050_s0 + $0x1e8] sm:$0xff] }
  0xf4   :  { %3174 = vst [vmem:[#allocation41_spill] sm:$0xff] %v2461_v26 }
  0xf5   :  { %v544_v59 = vpop.f32.mrf.mxu2  ;;  %v663_v32 = vpop.f32.mrf.mxu3  ;;  %1403 = vmatmul.msk.f32.gmra.mxu1 %vm174_vm0, %v2408_v58 }
  0xf6   :  { %v2422_v18 = vadd.f32 %v657_v25, %v544_v59  ;;  %v321_v62 = vpop.f32.mrf.mxu0  ;;  %1510 = vmatpush.msra.mxu1 %v1997_v34 }
  0xf7   :  { %v2448_v59 = vadd.f32 %v434_v61, %v321_v62 }
  0xf8   :  { %3172 = vst [vmem:[#allocation39_spill] sm:$0xff] %v2422_v18  ;;  %v2455_v18 = vld [vmem:[%s3050_s0 + $0x1c0] sm:$0xff]  ;;  %1511 = vmatpush.msra.mxu1 %v2054_v43 }
  0xf9   :  { %368 = vmatmul.f32.gmra.mxu0 %v2427_v10 }
  0xfa   :  { %594 = vmatmul.f32.gmra.mxu2 %v2427_v10  ;;  %1436 = vmatmul.msk.f32.gmra.mxu3 %vm174_vm0, %v2433_v5  ;;  %v440_v12 = vpop.f32.mrf.mxu1 }
  0xfb   :  { %1512 = vmatpush.msra.mxu1 %v2098_v53  ;;  %v2486_v53 = vld [vmem:[%s3050_s0 + $0x1f8] sm:$0xff] }
  0xfd   :  { %v547_v25 = vpop.f32.mrf.mxu2  ;;  %v666_v46 = vpop.f32.mrf.mxu3  ;;  %1404 = vmatmul.msk.f32.gmra.mxu1 %vm174_vm0, %v2433_v5  ;;  %v2480_v5 = vld [vmem:[%s3050_s0 + $0x1d0] sm:$0xff] }
  0xfe   :  { %v2450_v58 = vadd.f32 %v660_v51, %v547_v25  ;;  %v324_v19 = vpop.f32.mrf.mxu0  ;;  %1513 = vmatpush.msra.mxu1 %v2151_v49 }
  0xff   :  { %v2473_v62 = vadd.f32 %v437_v60, %v324_v19 }
 0x100   :  { %1514 = vmatpush.msra.mxu1 %v2207_v17 }
 0x101   :  { %371 = vmatmul.f32.gmra.mxu0 %v2455_v18 }
 0x102   :  { %597 = vmatmul.f32.gmra.mxu2 %v2455_v18  ;;  %1437 = vmatmul.msk.f32.gmra.mxu3 %vm174_vm0, %v2461_v26  ;;  %v443_v51 = vpop.f32.mrf.mxu1 }
 0x103   :  { %1515 = vmatpush.msra.mxu1 %v2266_v54 }
 0x105   :  { %v550_v34 = vpop.f32.mrf.mxu2  ;;  %v669_v61 = vpop.f32.mrf.mxu3  ;;  %1405 = vmatmul.msk.f32.gmra.mxu1 %vm174_vm0, %v2461_v26  ;;  %v2505_v26 = vld [vmem:[%s3050_s0 + $0x1e0] sm:$0xff] }
 0x106   :  { %v2475_v25 = vadd.f32 %v663_v32, %v550_v34  ;;  %v327_v43 = vpop.f32.mrf.mxu0  ;;  %1516 = vmatpush.msra.mxu1 %v2324_v4 }
 0x107   :  { %v2498_v19 = vadd.f32 %v440_v12, %v327_v43 }
 0x108   :  { %1517 = vmatpush.msra.mxu1 %v2385_v3  ;;  %v2523_v3 = vld [vmem:[%s3050_s0 + $0x1f0] sm:$0xff] }
 0x109   :  { %374 = vmatmul.f32.gmra.mxu0 %v2480_v5  ;;  %3175 = vst [vmem:[#allocation42_spill] sm:$0xff] %v2498_v19 }
 0x10a   :  { %600 = vmatmul.f32.gmra.mxu2 %v2480_v5  ;;  %1438 = vmatmul.msk.f32.gmra.mxu3 %vm174_vm0, %v2486_v53  ;;  %v446_v60 = vpop.f32.mrf.mxu1  ;;  %3179 = vst [vmem:[#allocation46_spill] sm:$0xff] %v2523_v3 }
 0x10b   :  { %1518 = vmatpush.msra.mxu1 %v81_v41 }
 0x10d   :  { %v553_v49 = vpop.f32.mrf.mxu2  ;;  %v672_v32 = vpop.f32.mrf.mxu3  ;;  %1406 = vmatmul.msk.f32.gmra.mxu1 %vm174_vm0, %v2486_v53 }
 0x10e   :  { %v2500_v34 = vadd.f32 %v666_v46, %v553_v49  ;;  %v330_v17 = vpop.f32.mrf.mxu0 }
 0x10f   :  { %v2516_v49 = vadd.f32 %v443_v51, %v330_v17 }
 0x110   :  { %3176 = vst [vmem:[#allocation43_spill] sm:$0xff] %v2500_v34 }
 0x111   :  { %377 = vmatmul.f32.gmra.mxu0 %v2505_v26  ;;  %3177 = vst [vmem:[#allocation44_spill] sm:$0xff] %v2516_v49 }
 0x112   :  { %603 = vmatmul.f32.gmra.mxu2 %v2505_v26  ;;  %1439 = vmatmul.msk.f32.vlgmr.msrb.gmra.mxu3 %vm174_vm0, %v1644_v31  ;;  %v449_v12 = vpop.f32.mrf.mxu1 }
 0x115   :  { %v556_v46 = vpop.f32.mrf.mxu2  ;;  %v675_v43 = vpop.f32.mrf.mxu3  ;;  %739 = vmatmul.f32.vlgmr.msrb.gmra.mxu1 %v1728_v55 }
 0x116   :  { %v2518_v4 = vadd.f32 %v669_v61, %v556_v46  ;;  %v333_v54 = vpop.f32.mrf.mxu0 }
 0x117   :  { %v2532_v17 = vadd.f32 %v446_v60, %v333_v54 }
 0x118   :  { %3178 = vst [vmem:[#allocation45_spill] sm:$0xff] %v2518_v4 }
 0x119   :  { %380 = vmatmul.f32.gmra.mxu0 %v2523_v3 }
 0x11a   :  { %606 = vmatmul.f32.gmra.mxu2 %v2523_v3  ;;  %1440 = vmatmul.msk.f32.gmra.mxu3 %vm174_vm0, %v1692_v45  ;;  %v452_v41 = vpop.f32.mrf.mxu1 }
 0x11d   :  { %v559_v51 = vpop.f32.mrf.mxu2  ;;  %v678_v61 = vpop.f32.mrf.mxu3  ;;  %742 = vmatmul.f32.gmra.mxu1 %v1775_v63 }
 0x11e   :  { %v2534_v46 = vadd.f32 %v672_v32, %v559_v51  ;;  %v336_v19 = vpop.f32.mrf.mxu0 }
 0x11f   :  { %v2544_v60 = vadd.f32 %v449_v12, %v336_v19 }
 0x121   :  { %965 = vmatmul.f32.vlgmr.msrb.gmra.mxu0 %v1728_v55 }
 0x122   :  { %1441 = vmatmul.msk.f32.gmra.mxu3 %vm174_vm0, %v1733_v56  ;;  %1471 = vmatmul.msk.f32.vlgmr.msrb.gmra.mxu2 %vm174_vm0, %v1644_v31  ;;  %v455_v4 = vpop.f32.mrf.mxu1 }
 0x125   :  { %v562_v49 = vpop.f32.mrf.mxu2  ;;  %v681_v3 = vpop.f32.mrf.mxu3  ;;  %745 = vmatmul.f32.gmra.mxu1 %v1793_v1 }
 0x126   :  { %v2546_v32 = vadd.f32 %v675_v43, %v562_v49  ;;  %v339_v54 = vpop.f32.mrf.mxu0 }
 0x127   :  { %v2556_v19 = vadd.f32 %v452_v41, %v339_v54 }
 0x129   :  { %968 = vmatmul.f32.gmra.mxu0 %v1775_v63 }
 0x12a   :  { %1442 = vmatmul.msk.f32.gmra.mxu3 %vm174_vm0, %v1781_v0  ;;  %1472 = vmatmul.msk.f32.gmra.mxu2 %vm174_vm0, %v1692_v45  ;;  %v458_v31 = vpop.f32.mrf.mxu1 }
 0x12d   :  { %v565_v55 = vpop.f32.mrf.mxu2  ;;  %v684_v34 = vpop.f32.mrf.mxu3  ;;  %748 = vmatmul.f32.gmra.mxu1 %v1820_v6 }
 0x12e   :  { %v2558_v12 = vadd.f32 %v678_v61, %v565_v55  ;;  %v342_v43 = vpop.f32.mrf.mxu0 }
 0x12f   :  { %v2568_v41 = vadd.f32 %v455_v4, %v342_v43 }
 0x131   :  { %971 = vmatmul.f32.gmra.mxu0 %v1793_v1 }
 0x132   :  { %1443 = vmatmul.msk.f32.gmra.mxu3 %vm174_vm0, %v1798_v2  ;;  %1473 = vmatmul.msk.f32.gmra.mxu2 %vm174_vm0, %v1733_v56  ;;  %v461_v45 = vpop.f32.mrf.mxu1 }
 0x135   :  { %v568_v63 = vpop.f32.mrf.mxu2  ;;  %v687_v51 = vpop.f32.mrf.mxu3  ;;  %751 = vmatmul.f32.gmra.mxu1 %v1837_v8 }
 0x136   :  { %v2570_v61 = vadd.f32 %v681_v3, %v568_v63  ;;  %v345_v54 = vpop.f32.mrf.mxu0 }
 0x137   :  { %v2580_v4 = vadd.f32 %v458_v31, %v345_v54 }
 0x139   :  { %974 = vmatmul.f32.gmra.mxu0 %v1820_v6 }
 0x13a   :  { %1444 = vmatmul.msk.f32.gmra.mxu3 %vm174_vm0, %v1826_v7  ;;  %1474 = vmatmul.msk.f32.gmra.mxu2 %vm174_vm0, %v1781_v0  ;;  %v464_v56 = vpop.f32.mrf.mxu1 }
 0x13d   :  { %v571_v1 = vpop.f32.mrf.mxu2  ;;  %v690_v49 = vpop.f32.mrf.mxu3  ;;  %754 = vmatmul.f32.gmra.mxu1 %v1867_v13 }
 0x13e   :  { %v2582_v3 = vadd.f32 %v684_v34, %v571_v1  ;;  %v348_v43 = vpop.f32.mrf.mxu0 }
 0x13f   :  { %v2592_v31 = vadd.f32 %v461_v45, %v348_v43 }
 0x141   :  { %977 = vmatmul.f32.gmra.mxu0 %v1837_v8 }
 0x142   :  { %1445 = vmatmul.msk.f32.gmra.mxu3 %vm174_vm0, %v1842_v9  ;;  %1475 = vmatmul.msk.f32.gmra.mxu2 %vm174_vm0, %v1798_v2  ;;  %v467_v0 = vpop.f32.mrf.mxu1 }
 0x145   :  { %v574_v6 = vpop.f32.mrf.mxu2  ;;  %v693_v55 = vpop.f32.mrf.mxu3  ;;  %757 = vmatmul.f32.gmra.mxu1 %v1884_v15 }
 0x146   :  { %v2594_v34 = vadd.f32 %v687_v51, %v574_v6  ;;  %v351_v54 = vpop.f32.mrf.mxu0 }
 0x147   :  { %v2604_v45 = vadd.f32 %v464_v56, %v351_v54 }
 0x149   :  { %980 = vmatmul.f32.gmra.mxu0 %v1867_v13 }
 0x14a   :  { %1446 = vmatmul.msk.f32.gmra.mxu3 %vm174_vm0, %v1873_v14  ;;  %1476 = vmatmul.msk.f32.gmra.mxu2 %vm174_vm0, %v1826_v7  ;;  %v470_v2 = vpop.f32.mrf.mxu1 }
 0x14d   :  { %v577_v8 = vpop.f32.mrf.mxu2  ;;  %v696_v63 = vpop.f32.mrf.mxu3  ;;  %760 = vmatmul.f32.gmra.mxu1 %v1911_v20 }
 0x14e   :  { %v2606_v51 = vadd.f32 %v690_v49, %v577_v8  ;;  %v354_v43 = vpop.f32.mrf.mxu0 }
 0x14f   :  { %v2616_v56 = vadd.f32 %v467_v0, %v354_v43 }
 0x151   :  { %983 = vmatmul.f32.gmra.mxu0 %v1884_v15 }
 0x152   :  { %1447 = vmatmul.msk.f32.gmra.mxu3 %vm174_vm0, %v1889_v16  ;;  %1477 = vmatmul.msk.f32.gmra.mxu2 %vm174_vm0, %v1842_v9  ;;  %v473_v7 = vpop.f32.mrf.mxu1 }
 0x155   :  { %v580_v13 = vpop.f32.mrf.mxu2  ;;  %v699_v1 = vpop.f32.mrf.mxu3  ;;  %763 = vmatmul.f32.gmra.mxu1 %v1928_v22 }
 0x156   :  { %v2618_v49 = vadd.f32 %v693_v55, %v580_v13  ;;  %v357_v54 = vpop.f32.mrf.mxu0 }
 0x157   :  { %v2628_v0 = vadd.f32 %v470_v2, %v357_v54 }
 0x159   :  { %986 = vmatmul.f32.gmra.mxu0 %v1911_v20 }
 0x15a   :  { %1448 = vmatmul.msk.f32.gmra.mxu3 %vm174_vm0, %v1917_v21  ;;  %1478 = vmatmul.msk.f32.gmra.mxu2 %vm174_vm0, %v1873_v14  ;;  %v476_v9 = vpop.f32.mrf.mxu1 }
 0x15d   :  { %v583_v15 = vpop.f32.mrf.mxu2  ;;  %v702_v6 = vpop.f32.mrf.mxu3  ;;  %766 = vmatmul.f32.gmra.mxu1 %v1958_v27 }
 0x15e   :  { %v2630_v55 = vadd.f32 %v696_v63, %v583_v15  ;;  %v360_v43 = vpop.f32.mrf.mxu0 }
 0x15f   :  { %v2640_v2 = vadd.f32 %v473_v7, %v360_v43 }
 0x161   :  { %989 = vmatmul.f32.gmra.mxu0 %v1928_v22 }
 0x162   :  { %1449 = vmatmul.msk.f32.gmra.mxu3 %vm174_vm0, %v1933_v23  ;;  %1479 = vmatmul.msk.f32.gmra.mxu2 %vm174_vm0, %v1889_v16  ;;  %v479_v14 = vpop.f32.mrf.mxu1 }
 0x165   :  { %v586_v20 = vpop.f32.mrf.mxu2  ;;  %v705_v8 = vpop.f32.mrf.mxu3  ;;  %769 = vmatmul.f32.gmra.mxu1 %v1975_v29 }
 0x166   :  { %v2642_v63 = vadd.f32 %v699_v1, %v586_v20  ;;  %v363_v54 = vpop.f32.mrf.mxu0 }
 0x167   :  { %v2652_v7 = vadd.f32 %v476_v9, %v363_v54 }
 0x169   :  { %992 = vmatmul.f32.gmra.mxu0 %v1958_v27  ;;  %3180 = vst [vmem:[#allocation47_spill] sm:$0xff] %v2652_v7 }
 0x16a   :  { %1450 = vmatmul.msk.f32.gmra.mxu3 %vm174_vm0, %v1964_v28  ;;  %1480 = vmatmul.msk.f32.gmra.mxu2 %vm174_vm0, %v1917_v21  ;;  %v482_v16 = vpop.f32.mrf.mxu1 }
 0x16d   :  { %v589_v22 = vpop.f32.mrf.mxu2  ;;  %v708_v13 = vpop.f32.mrf.mxu3  ;;  %772 = vmatmul.f32.gmra.mxu1 %v2002_v35 }
 0x16e   :  { %v2654_v1 = vadd.f32 %v702_v6, %v589_v22  ;;  %v366_v43 = vpop.f32.mrf.mxu0 }
 0x16f   :  { %v2664_v9 = vadd.f32 %v479_v14, %v366_v43 }
 0x170   :  { %3181 = vst [vmem:[#allocation48_spill] sm:$0xff] %v2654_v1 }
 0x171   :  { %995 = vmatmul.f32.gmra.mxu0 %v1975_v29  ;;  %3182 = vst [vmem:[#allocation49_spill] sm:$0xff] %v2664_v9  ;;  %v3206_v9 = vld [vmem:[#allocation12_spill] sm:$0xff] }
 0x172   :  { %1451 = vmatmul.msk.f32.gmra.mxu3 %vm174_vm0, %v1980_v30  ;;  %1481 = vmatmul.msk.f32.gmra.mxu2 %vm174_vm0, %v1933_v23  ;;  %v485_v21 = vpop.f32.mrf.mxu1 }
 0x175   :  { %v592_v27 = vpop.f32.mrf.mxu2  ;;  %v711_v15 = vpop.f32.mrf.mxu3  ;;  %775 = vmatmul.f32.gmra.mxu1 %v2019_v37 }
 0x176   :  { %v2666_v6 = vadd.f32 %v705_v8, %v592_v27  ;;  %v369_v54 = vpop.f32.mrf.mxu0 }
 0x177   :  { %v2676_v14 = vadd.f32 %v482_v16, %v369_v54 }
 0x178   :  { %3183 = vst [vmem:[#allocation50_spill] sm:$0xff] %v2666_v6  ;;  %v3186_v6 = vld [vmem:[#allocation3_spill] sm:$0xff] }
 0x179   :  { %998 = vmatmul.f32.gmra.mxu0 %v2002_v35  ;;  %3184 = vst [vmem:[#allocation51_spill] sm:$0xff] %v2676_v14  ;;  %v3190_v14 = vld [vmem:[#allocation5_spill] sm:$0xff] }
 0x17a   :  { %1452 = vmatmul.msk.f32.gmra.mxu3 %vm174_vm0, %v2008_v36  ;;  %1482 = vmatmul.msk.f32.gmra.mxu2 %vm174_vm0, %v1964_v28  ;;  %v488_v23 = vpop.f32.mrf.mxu1 }
 0x17d   :  { %v595_v29 = vpop.f32.mrf.mxu2  ;;  %v714_v20 = vpop.f32.mrf.mxu3  ;;  %778 = vmatmul.f32.gmra.mxu1 %v2041_v40 }
 0x17e   :  { %v2678_v8 = vadd.f32 %v708_v13, %v595_v29  ;;  %v372_v43 = vpop.f32.mrf.mxu0 }
 0x17f   :  { %v2688_v16 = vadd.f32 %v485_v21, %v372_v43 }
 0x180   :  { %3185 = vst [vmem:[#allocation52_spill] sm:$0xff] %v2678_v8 }
 0x181   :  { %1001 = vmatmul.f32.gmra.mxu0 %v2019_v37  ;;  %3187 = vst [vmem:[#allocation3_spill] sm:$0xff] %v2688_v16  ;;  %v3189_v37 = vld [vmem:[#allocation2_spill] sm:$0xff]  ;;  %v3194_v16 = vld [vmem:[#allocation7_spill] sm:$0xff] }
 0x182   :  { %1453 = vmatmul.msk.f32.gmra.mxu3 %vm174_vm0, %v2024_v38  ;;  %1483 = vmatmul.msk.f32.gmra.mxu2 %vm174_vm0, %v1980_v30  ;;  %v491_v28 = vpop.f32.mrf.mxu1 }
 0x185   :  { %v598_v35 = vpop.f32.mrf.mxu2  ;;  %v717_v22 = vpop.f32.mrf.mxu3  ;;  %781 = vmatmul.f32.gmra.mxu1 %v3186_v6 }
 0x186   :  { %v2690_v13 = vadd.f32 %v711_v15, %v598_v35  ;;  %v375_v54 = vpop.f32.mrf.mxu0 }
 0x187   :  { %v2700_v21 = vadd.f32 %v488_v23, %v375_v54 }
 0x188   :  { %3188 = vst [vmem:[#allocation53_spill] sm:$0xff] %v2690_v13 }
 0x189   :  { %1004 = vmatmul.f32.gmra.mxu0 %v2041_v40  ;;  %3191 = vst [vmem:[#allocation2_spill] sm:$0xff] %v2700_v21  ;;  %v3193_v40 = vld [vmem:[#allocation4_spill] sm:$0xff]  ;;  %v3198_v21 = vld [vmem:[#allocation11_spill] sm:$0xff] }
 0x18a   :  { %1454 = vmatmul.msk.f32.gmra.mxu3 %vm174_vm0, %v3189_v37  ;;  %1484 = vmatmul.msk.f32.gmra.mxu2 %vm174_vm0, %v2008_v36  ;;  %v494_v30 = vpop.f32.mrf.mxu1 }
 0x18d   :  { %v601_v27 = vpop.f32.mrf.mxu2  ;;  %v720_v8 = vpop.f32.mrf.mxu3  ;;  %784 = vmatmul.f32.gmra.mxu1 %v3190_v14 }
 0x18e   :  { %v2702_v15 = vadd.f32 %v714_v20, %v601_v27  ;;  %v378_v43 = vpop.f32.mrf.mxu0 }
 0x18f   :  { %v2712_v23 = vadd.f32 %v491_v28, %v378_v43  ;;  %v2739_v43 = vld [vmem:[%s3051_s2] ss:$0 sm:$0xff] }
 0x190   :  { %3192 = vst [vmem:[#allocation5_spill] sm:$0xff] %v2702_v15 }
 0x191   :  { %1007 = vmatmul.f32.gmra.mxu0 %v3186_v6  ;;  %3195 = vst [vmem:[#allocation4_spill] sm:$0xff] %v2712_v23  ;;  %v3197_v6 = vld [vmem:[#allocation6_spill] sm:$0xff]  ;;  %v3202_v23 = vld [vmem:[#allocation15_spill] sm:$0xff] }
 0x192   :  { %1455 = vmatmul.msk.f32.gmra.mxu3 %vm174_vm0, %v3193_v40  ;;  %1485 = vmatmul.msk.f32.gmra.mxu2 %vm174_vm0, %v2024_v38  ;;  %v740_v36 = vpop.f32.mrf.mxu1 }
 0x195   :  { %v604_v29 = vpop.f32.mrf.mxu2  ;;  %v853_v13 = vpop.f32.mrf.mxu3  ;;  %787 = vmatmul.f32.gmra.mxu1 %v3194_v16 }
 0x196   :  { %v2714_v20 = vadd.f32 %v717_v22, %v604_v29  ;;  %v381_v27 = vpop.f32.mrf.mxu0 }
 0x197   :  { %v2724_v28 = vadd.f32 %v494_v30, %v381_v27  ;;  %v854_v30 = vadd.f32 %v853_v13, %v740_v36 }
 0x198   :  { %3196 = vst [vmem:[#allocation7_spill] sm:$0xff] %v2714_v20 }
 0x199   :  { %1010 = vmatmul.f32.gmra.mxu0 %v3190_v14  ;;  %3199 = vst [vmem:[#allocation6_spill] sm:$0xff] %v2724_v28  ;;  %v3201_v14 = vld [vmem:[#allocation8_spill] sm:$0xff] }
 0x19a   :  { %1456 = vmatmul.msk.f32.gmra.mxu3 %vm174_vm0, %v3197_v6  ;;  %1486 = vmatmul.msk.f32.gmra.mxu2 %vm174_vm0, %v3189_v37  ;;  %v743_v38 = vpop.f32.mrf.mxu1 }
 0x19d   :  { %v607_v35 = vpop.f32.mrf.mxu2  ;;  %v856_v15 = vpop.f32.mrf.mxu3  ;;  %790 = vmatmul.f32.gmra.mxu1 %v3198_v21 }
 0x19e   :  { %v2726_v22 = vadd.f32 %v720_v8, %v607_v35  ;;  %v966_v29 = vpop.f32.mrf.mxu0 }
 0x1a0   :  { %3200 = vst [vmem:[#allocation11_spill] sm:$0xff] %v2726_v22  ;;  %v3204_v22 = vld [vmem:[#allocation10_spill] sm:$0xff] }
 0x1a1   :  { %1013 = vmatmul.f32.gmra.mxu0 %v3194_v16  ;;  %v3203_v16 = vld [vmem:[#allocation9_spill] sm:$0xff] }
 0x1a2   :  { %1457 = vmatmul.msk.f32.gmra.mxu3 %vm174_vm0, %v3201_v14  ;;  %1487 = vmatmul.msk.f32.gmra.mxu2 %vm174_vm0, %v3193_v40  ;;  %v746_v37 = vpop.f32.mrf.mxu1  ;;  %v3205_v28 = vmax.f32 %v3203_v16, %v3204_v22  ;;  %v3208_v22 = vld [vmem:[#allocation13_spill] sm:$0xff] }
 0x1a5   :  { %v859_v54 = vpop.f32.mrf.mxu3  ;;  %v1079_v20 = vpop.f32.mrf.mxu2  ;;  %793 = vmatmul.f32.gmra.mxu1 %v3202_v23 }
 0x1a6   :  { %v1080_v8 = vadd.f32 %v1079_v20, %v966_v29  ;;  %v969_v35 = vpop.f32.mrf.mxu0 }
 0x1a8   :  { %v1207_v27 = vmax.f32 %v854_v30, %v1080_v8  ;;  %v3207_v30 = vld [vmem:[#allocation19_spill] sm:$0xff]  ;;  %v857_v8 = vadd.f32 %v856_v15, %v743_v38 }
 0x1a9   :  { %1016 = vmatmul.f32.gmra.mxu0 %v3198_v21 }
 0x1aa   :  { %v1239_v40 = vmax.f32 %v3205_v28, %v1207_v27  ;;  %1458 = vmatmul.msk.f32.gmra.mxu3 %vm174_vm0, %v3206_v9  ;;  %1488 = vmatmul.msk.f32.gmra.mxu2 %vm174_vm0, %v3197_v6  ;;  %v749_v13 = vpop.f32.mrf.mxu1  ;;  %v3209_v6 = vld [vmem:[#allocation14_spill] sm:$0xff] }
 0x1ab   :  { %v3210_v27 = vmax.f32 %v3208_v22, %v3209_v6  ;;  %v3213_v22 = vld [vmem:[#allocation17_spill] sm:$0xff] }
 0x1ac   :  { %v1275_v36 = vadd.f32 %v2739_v43, %v1239_v40  ;;  %v3211_v40 = vld [vmem:[#allocation16_spill] sm:$0xff] }
 0x1ad   :  { %v862_v20 = vpop.f32.mrf.mxu3  ;;  %v1082_v29 = vpop.f32.mrf.mxu2  ;;  %796 = vmatmul.f32.gmra.mxu1 %v3207_v30 }
 0x1ae   :  { %v1307_v1 = vmax.f32 %v1275_v36, 0.0  ;;  %v1083_v21 = vadd.f32 %v1082_v29, %v969_v35  ;;  %v972_v7 = vpop.f32.mrf.mxu0  ;;  %v3212_v29 = vld [vmem:[#allocation23_spill] sm:$0xff] }
 0x1b0   :  { %1339 = vst [vmem:[%s3052_s3] sm:$0xff] %v1307_v1  ;;  %v1208_v28 = vmax.f32 %v857_v8, %v1083_v21  ;;  %v860_v1 = vadd.f32 %v859_v54, %v746_v37 }
 0x1b1   :  { %1019 = vmatmul.f32.gmra.mxu0 %v3202_v23 }
 0x1b2   :  { %v1240_v16 = vmax.f32 %v3210_v27, %v1208_v28  ;;  %1459 = vmatmul.msk.f32.gmra.mxu3 %vm174_vm0, %v3211_v40  ;;  %1489 = vmatmul.msk.f32.gmra.mxu2 %vm174_vm0, %v3201_v14  ;;  %v752_v15 = vpop.f32.mrf.mxu1  ;;  %v3214_v14 = vld [vmem:[#allocation18_spill] sm:$0xff] }
 0x1b3   :  { %v3215_v6 = vmax.f32 %v3213_v22, %v3214_v14  ;;  %v3218_v22 = vld [vmem:[#allocation21_spill] sm:$0xff] }
 0x1b4   :  { %v1276_v38 = vadd.f32 %v2739_v43, %v1240_v16  ;;  %v3216_v16 = vld [vmem:[#allocation20_spill] sm:$0xff] }
 0x1b5   :  { %v865_v35 = vpop.f32.mrf.mxu3  ;;  %v1085_v36 = vpop.f32.mrf.mxu2  ;;  %799 = vmatmul.f32.gmra.mxu1 %v3212_v29 }
 0x1b6   :  { %v1308_v8 = vmax.f32 %v1276_v38, 0.0  ;;  %v1086_v23 = vadd.f32 %v1085_v36, %v972_v7  ;;  %v975_v21 = vpop.f32.mrf.mxu0  ;;  %v3217_v36 = vld [vmem:[#allocation27_spill] sm:$0xff] }
 0x1b8   :  { %1340 = vst [vmem:[%s3052_s3 + $0x8] sm:$0xff] %v1308_v8  ;;  %v1209_v28 = vmax.f32 %v860_v1, %v1086_v23  ;;  %v863_v1 = vadd.f32 %v862_v20, %v749_v13 }
 0x1b9   :  { %1022 = vmatmul.f32.gmra.mxu0 %v3207_v30 }
 0x1ba   :  { %v1241_v27 = vmax.f32 %v3215_v6, %v1209_v28  ;;  %1460 = vmatmul.msk.f32.gmra.mxu3 %vm174_vm0, %v3216_v16  ;;  %1490 = vmatmul.msk.f32.gmra.mxu2 %vm174_vm0, %v3206_v9  ;;  %v755_v54 = vpop.f32.mrf.mxu1  ;;  %v3219_v9 = vld [vmem:[#allocation22_spill] sm:$0xff] }
 0x1bb   :  { %v3220_v14 = vmax.f32 %v3218_v22, %v3219_v9 }
 0x1bc   :  { %v1277_v7 = vadd.f32 %v2739_v43, %v1241_v27  ;;  %v3221_v27 = vld [vmem:[#allocation24_spill] sm:$0xff] }
 0x1bd   :  { %v868_v37 = vpop.f32.mrf.mxu3  ;;  %v1088_v38 = vpop.f32.mrf.mxu2  ;;  %802 = vmatmul.f32.gmra.mxu1 %v3217_v36 }
 0x1be   :  { %v1309_v8 = vmax.f32 %v1277_v7, 0.0  ;;  %v1089_v30 = vadd.f32 %v1088_v38, %v975_v21  ;;  %v978_v23 = vpop.f32.mrf.mxu0  ;;  %v866_v38 = vadd.f32 %v865_v35, %v752_v15 }
 0x1c0   :  { %1341 = vst [vmem:[%s3052_s3 + $0x10] sm:$0xff] %v1309_v8  ;;  %v1210_v28 = vmax.f32 %v863_v1, %v1089_v30 }
 0x1c1   :  { %1025 = vmatmul.f32.gmra.mxu0 %v3212_v29 }
 0x1c2   :  { %v1242_v6 = vmax.f32 %v3220_v14, %v1210_v28  ;;  %1461 = vmatmul.msk.f32.gmra.mxu3 %vm174_vm0, %v3221_v27  ;;  %1491 = vmatmul.msk.f32.gmra.mxu2 %vm174_vm0, %v3211_v40  ;;  %v758_v13 = vpop.f32.mrf.mxu1  ;;  %v3222_v28 = vld [vmem:[#allocation25_spill] sm:$0xff]  ;;  %v3223_v40 = vld [vmem:[#allocation26_spill] sm:$0xff]  ;;  %v3225_v14 = vld [vmem:[#allocation28_spill] sm:$0xff] }
 0x1c3   :  { %v3224_v22 = vmax.f32 %v3222_v28, %v3223_v40 }
 0x1c4   :  { %v1278_v20 = vadd.f32 %v2739_v43, %v1242_v6 }
 0x1c5   :  { %v871_v21 = vpop.f32.mrf.mxu3  ;;  %v1091_v7 = vpop.f32.mrf.mxu2  ;;  %805 = vmatmul.f32.gmra.mxu1 %v2282_v52 }
 0x1c6   :  { %v1310_v1 = vmax.f32 %v1278_v20, 0.0  ;;  %v1092_v29 = vadd.f32 %v1091_v7, %v978_v23  ;;  %v981_v8 = vpop.f32.mrf.mxu0  ;;  %v869_v20 = vadd.f32 %v868_v37, %v755_v54 }
 0x1c8   :  { %1342 = vst [vmem:[%s3052_s3 + $0x18] sm:$0xff] %v1310_v1  ;;  %v1211_v30 = vmax.f32 %v866_v38, %v1092_v29  ;;  %v3226_v29 = vld [vmem:[#allocation29_spill] sm:$0xff] }
 0x1c9   :  { %1028 = vmatmul.f32.gmra.mxu0 %v3217_v36 }
 0x1ca   :  { %v1243_v9 = vmax.f32 %v3224_v22, %v1211_v30  ;;  %1462 = vmatmul.msk.f32.gmra.mxu3 %vm174_vm0, %v3225_v14  ;;  %1492 = vmatmul.msk.f32.gmra.mxu2 %vm174_vm0, %v3216_v16  ;;  %v761_v15 = vpop.f32.mrf.mxu1  ;;  %v3227_v16 = vld [vmem:[#allocation30_spill] sm:$0xff]  ;;  %v872_v22 = vadd.f32 %v871_v21, %v758_v13 }
 0x1cb   :  { %v3228_v30 = vmax.f32 %v3226_v29, %v3227_v16 }
 0x1cc   :  { %v1279_v35 = vadd.f32 %v2739_v43, %v1243_v9 }
 0x1cd   :  { %v874_v23 = vpop.f32.mrf.mxu3  ;;  %v1094_v6 = vpop.f32.mrf.mxu2  ;;  %808 = vmatmul.f32.gmra.mxu1 %v2308_v11 }
 0x1ce   :  { %v1311_v7 = vmax.f32 %v1279_v35, 0.0  ;;  %v1095_v36 = vadd.f32 %v1094_v6, %v981_v8  ;;  %v984_v38 = vpop.f32.mrf.mxu0 }
 0x1d0   :  { %1343 = vst [vmem:[%s3052_s3 + $0x20] sm:$0xff] %v1311_v7  ;;  %v1212_v1 = vmax.f32 %v869_v20, %v1095_v36 }
 0x1d1   :  { %1031 = vmatmul.f32.gmra.mxu0 %v2282_v52 }
 0x1d2   :  { %v1244_v28 = vmax.f32 %v3228_v30, %v1212_v1  ;;  %1463 = vmatmul.msk.f32.gmra.mxu3 %vm174_vm0, %v2287_v47  ;;  %1493 = vmatmul.msk.f32.gmra.mxu2 %vm174_vm0, %v3221_v27  ;;  %v764_v54 = vpop.f32.mrf.mxu1  ;;  %v3229_v27 = vld [vmem:[#allocation31_spill] sm:$0xff]  ;;  %v875_v1 = vadd.f32 %v874_v23, %v761_v15  ;;  %v3231_v30 = vld [vmem:[#allocation32_spill] sm:$0xff] }
 0x1d3   :  { %v3230_v20 = vmax.f32 %v2301_v44, %v3229_v27 }
 0x1d4   :  { %v1280_v37 = vadd.f32 %v2739_v43, %v1244_v28 }
 0x1d5   :  { %v877_v8 = vpop.f32.mrf.mxu3  ;;  %v1097_v40 = vpop.f32.mrf.mxu2  ;;  %811 = vmatmul.f32.gmra.mxu1 %v2343_v50 }
 0x1d6   :  { %v1312_v9 = vmax.f32 %v1280_v37, 0.0  ;;  %v1098_v52 = vadd.f32 %v1097_v40, %v984_v38  ;;  %v987_v35 = vpop.f32.mrf.mxu0  ;;  %v3234_v40 = vld [vmem:[#allocation34_spill] sm:$0xff] }
 0x1d8   :  { %1344 = vst [vmem:[%s3052_s3 + $0x28] sm:$0xff] %v1312_v9  ;;  %v1213_v6 = vmax.f32 %v872_v22, %v1098_v52  ;;  %v878_v52 = vadd.f32 %v877_v8, %v764_v54 }
 0x1d9   :  { %1034 = vmatmul.f32.gmra.mxu0 %v2308_v11 }
 0x1da   :  { %v1245_v7 = vmax.f32 %v3230_v20, %v1213_v6  ;;  %1464 = vmatmul.msk.f32.gmra.mxu3 %vm174_vm0, %v2314_v57  ;;  %1494 = vmatmul.msk.f32.gmra.mxu2 %vm174_vm0, %v3225_v14  ;;  %v767_v13 = vpop.f32.mrf.mxu1  ;;  %v3232_v14 = vld [vmem:[#allocation33_spill] sm:$0xff]  ;;  %v3235_v20 = vld [vmem:[#allocation35_spill] sm:$0xff] }
 0x1db   :  { %v3233_v28 = vmax.f32 %v3231_v30, %v3232_v14 }
 0x1dc   :  { %v1281_v21 = vadd.f32 %v2739_v43, %v1245_v7 }
 0x1dd   :  { %v880_v36 = vpop.f32.mrf.mxu3  ;;  %v1100_v38 = vpop.f32.mrf.mxu2  ;;  %814 = vmatmul.f32.gmra.mxu1 %v2370_v42 }
 0x1de   :  { %v1313_v29 = vmax.f32 %v1281_v21, 0.0  ;;  %v1101_v11 = vadd.f32 %v1100_v38, %v987_v35  ;;  %v990_v16 = vpop.f32.mrf.mxu0  ;;  %v3238_v38 = vld [vmem:[#allocation37_spill] sm:$0xff] }
 0x1e0   :  { %1345 = vst [vmem:[%s3052_s3 + $0x30] sm:$0xff] %v1313_v29  ;;  %v1214_v44 = vmax.f32 %v875_v1, %v1101_v11  ;;  %v881_v11 = vadd.f32 %v880_v36, %v767_v13 }
 0x1e1   :  { %1037 = vmatmul.f32.gmra.mxu0 %v2343_v50 }
 0x1e2   :  { %v1246_v37 = vmax.f32 %v3233_v28, %v1214_v44  ;;  %1465 = vmatmul.msk.f32.gmra.mxu3 %vm174_vm0, %v3234_v40  ;;  %1495 = vmatmul.msk.f32.gmra.mxu2 %vm174_vm0, %v2287_v47  ;;  %v770_v15 = vpop.f32.mrf.mxu1  ;;  %v3236_v47 = vld [vmem:[#allocation36_spill] sm:$0xff]  ;;  %v3240_v28 = vld [vmem:[#allocation38_spill] sm:$0xff] }
 0x1e3   :  { %v3237_v7 = vmax.f32 %v3235_v20, %v3236_v47 }
 0x1e4   :  { %v1282_v23 = vadd.f32 %v2739_v43, %v1246_v37 }
 0x1e5   :  { %v883_v22 = vpop.f32.mrf.mxu3  ;;  %v1103_v9 = vpop.f32.mrf.mxu2  ;;  %817 = vmatmul.f32.gmra.mxu1 %v2402_v24 }
 0x1e6   :  { %v1314_v35 = vmax.f32 %v1282_v23, 0.0  ;;  %v1104_v50 = vadd.f32 %v1103_v9, %v990_v16  ;;  %v993_v6 = vpop.f32.mrf.mxu0  ;;  %v884_v9 = vadd.f32 %v883_v22, %v770_v15 }
 0x1e8   :  { %1346 = vst [vmem:[%s3052_s3 + $0x38] sm:$0xff] %v1314_v35  ;;  %v1215_v27 = vmax.f32 %v878_v52, %v1104_v50 }
 0x1e9   :  { %1040 = vmatmul.f32.gmra.mxu0 %v2370_v42 }
 0x1ea   :  { %v1247_v21 = vmax.f32 %v3237_v7, %v1215_v27  ;;  %1466 = vmatmul.msk.f32.gmra.mxu3 %vm174_vm0, %v3238_v38  ;;  %1496 = vmatmul.msk.f32.gmra.mxu2 %vm174_vm0, %v2314_v57  ;;  %v773_v54 = vpop.f32.mrf.mxu1  ;;  %v3239_v57 = vmax.f32 %v2395_v33, %v2397_v48  ;;  %v3241_v33 = vld [vmem:[#allocation39_spill] sm:$0xff] }
 0x1ec   :  { %v1283_v8 = vadd.f32 %v2739_v43, %v1247_v21 }
 0x1ed   :  { %v886_v1 = vpop.f32.mrf.mxu3  ;;  %v1106_v29 = vpop.f32.mrf.mxu2  ;;  %820 = vmatmul.f32.gmra.mxu1 %v2427_v10 }
 0x1ee   :  { %v1315_v16 = vmax.f32 %v1283_v8, 0.0  ;;  %v1107_v42 = vadd.f32 %v1106_v29, %v993_v6  ;;  %v996_v44 = vpop.f32.mrf.mxu0  ;;  %v3243_v6 = vld [vmem:[#allocation40_spill] sm:$0xff]  ;;  %v887_v47 = vadd.f32 %v886_v1, %v773_v54  ;;  %v3245_v29 = vld [vmem:[#allocation41_spill] sm:$0xff] }
 0x1f0   :  { %1347 = vst [vmem:[%s3052_s3 + $0x40] sm:$0xff] %v1315_v16  ;;  %v1216_v30 = vmax.f32 %v881_v11, %v1107_v42 }
 0x1f1   :  { %1043 = vmatmul.f32.gmra.mxu0 %v2402_v24 }
 0x1f2   :  { %v1248_v14 = vmax.f32 %v3239_v57, %v1216_v30  ;;  %1467 = vmatmul.msk.f32.gmra.mxu3 %vm174_vm0, %v3240_v28  ;;  %1497 = vmatmul.msk.f32.gmra.mxu2 %vm174_vm0, %v3234_v40  ;;  %v776_v13 = vpop.f32.mrf.mxu1  ;;  %v3242_v40 = vmax.f32 %v2420_v39, %v3241_v33 }
 0x1f4   :  { %v1284_v36 = vadd.f32 %v2739_v43, %v1248_v14 }
 0x1f5   :  { %v889_v37 = vpop.f32.mrf.mxu3  ;;  %v1109_v23 = vpop.f32.mrf.mxu2  ;;  %823 = vmatmul.f32.gmra.mxu1 %v2455_v18 }
 0x1f6   :  { %v1316_v52 = vmax.f32 %v1284_v36, 0.0  ;;  %v1110_v24 = vadd.f32 %v1109_v23, %v996_v44  ;;  %v999_v35 = vpop.f32.mrf.mxu0  ;;  %v890_v42 = vadd.f32 %v889_v37, %v776_v13  ;;  %v3247_v37 = vld [vmem:[#allocation46_spill] sm:$0xff] }
 0x1f8   :  { %1348 = vst [vmem:[%s3052_s3 + $0x48] sm:$0xff] %v1316_v52  ;;  %v1217_v48 = vmax.f32 %v884_v9, %v1110_v24  ;;  %v3249_v24 = vld [vmem:[#allocation43_spill] sm:$0xff] }
 0x1f9   :  { %1046 = vmatmul.f32.gmra.mxu0 %v2427_v10 }
 0x1fa   :  { %v1249_v50 = vmax.f32 %v3242_v40, %v1217_v48  ;;  %1468 = vmatmul.msk.f32.gmra.mxu3 %vm174_vm0, %v3243_v6  ;;  %1498 = vmatmul.msk.f32.gmra.mxu2 %vm174_vm0, %v3238_v38  ;;  %v779_v15 = vpop.f32.mrf.mxu1  ;;  %v3244_v38 = vmax.f32 %v2448_v59, %v2450_v58  ;;  %v3246_v59 = vmax.f32 %v2473_v62, %v2475_v25  ;;  %v3248_v25 = vld [vmem:[#allocation42_spill] sm:$0xff] }
 0x1fc   :  { %v1285_v22 = vadd.f32 %v2739_v43, %v1249_v50 }
 0x1fd   :  { %v892_v27 = vpop.f32.mrf.mxu3  ;;  %v1112_v20 = vpop.f32.mrf.mxu2  ;;  %826 = vmatmul.f32.gmra.mxu1 %v2480_v5 }
 0x1fe   :  { %v1317_v7 = vmax.f32 %v1285_v22, 0.0  ;;  %v1113_v10 = vadd.f32 %v1112_v20, %v999_v35  ;;  %v1002_v21 = vpop.f32.mrf.mxu0  ;;  %v893_v23 = vadd.f32 %v892_v27, %v779_v15  ;;  %v3250_v35 = vmax.f32 %v3248_v25, %v3249_v24 }
 0x200   :  { %1349 = vst [vmem:[%s3052_s3 + $0x50] sm:$0xff] %v1317_v7  ;;  %v1218_v39 = vmax.f32 %v887_v47, %v1113_v10  ;;  %v3251_v47 = vld [vmem:[#allocation44_spill] sm:$0xff]  ;;  %v3252_v7 = vld [vmem:[#allocation45_spill] sm:$0xff] }
 0x201   :  { %1049 = vmatmul.f32.gmra.mxu0 %v2455_v18  ;;  %v3253_v10 = vmax.f32 %v3251_v47, %v3252_v7 }
 0x202   :  { %v1250_v8 = vmax.f32 %v3244_v38, %v1218_v39  ;;  %1469 = vmatmul.msk.f32.gmra.mxu3 %vm174_vm0, %v3245_v29  ;;  %1499 = vmatmul.msk.f32.gmra.mxu2 %vm174_vm0, %v3240_v28  ;;  %v782_v54 = vpop.f32.mrf.mxu1 }
 0x204   :  { %v1286_v1 = vadd.f32 %v2739_v43, %v1250_v8 }
 0x205   :  { %v895_v11 = vpop.f32.mrf.mxu3  ;;  %v1115_v16 = vpop.f32.mrf.mxu2  ;;  %829 = vmatmul.f32.gmra.mxu1 %v2505_v26 }
 0x206   :  { %v1318_v44 = vmax.f32 %v1286_v1, 0.0  ;;  %v1116_v18 = vadd.f32 %v1115_v16, %v1002_v21  ;;  %v1005_v30 = vpop.f32.mrf.mxu0  ;;  %v896_v15 = vadd.f32 %v895_v11, %v782_v54 }
 0x208   :  { %1350 = vst [vmem:[%s3052_s3 + $0x58] sm:$0xff] %v1318_v44  ;;  %v1219_v58 = vmax.f32 %v890_v42, %v1116_v18  ;;  %v3254_v42 = vmax.f32 %v2532_v17, %v2534_v46 }
 0x209   :  { %1052 = vmatmul.f32.gmra.mxu0 %v2480_v5 }
 0x20a   :  { %v1251_v57 = vmax.f32 %v3246_v59, %v1219_v58  ;;  %1470 = vmatmul.msk.f32.gmra.mxu3 %vm174_vm0, %v2486_v53  ;;  %1500 = vmatmul.msk.f32.gmra.mxu2 %vm174_vm0, %v3243_v6  ;;  %v785_v14 = vpop.f32.mrf.mxu1 }
 0x20c   :  { %v1287_v28 = vadd.f32 %v2739_v43, %v1251_v57 }
 0x20d   :  { %v898_v13 = vpop.f32.mrf.mxu3  ;;  %v1118_v36 = vpop.f32.mrf.mxu2  ;;  %832 = vmatmul.f32.gmra.mxu1 %v3247_v37 }
 0x20e   :  { %v1319_v9 = vmax.f32 %v1287_v28, 0.0  ;;  %v1119_v5 = vadd.f32 %v1118_v36, %v1005_v30  ;;  %v1008_v52 = vpop.f32.mrf.mxu0 }
 0x210   :  { %1351 = vst [vmem:[%s3052_s3 + $0x60] sm:$0xff] %v1319_v9  ;;  %v1220_v62 = vmax.f32 %v893_v23, %v1119_v5 }
 0x211   :  { %1055 = vmatmul.f32.gmra.mxu0 %v2505_v26 }
 0x212   :  { %v1252_v48 = vmax.f32 %v3250_v35, %v1220_v62  ;;  %1501 = vmatmul.msk.f32.gmra.mxu2 %vm174_vm0, %v3245_v29  ;;  %1502 = vmatmul.msk.f32.vlgmr.msra.gmra.mxu3 %vm174_vm0, %v2486_v53  ;;  %v788_v33 = vpop.f32.mrf.mxu1  ;;  %v899_v29 = vadd.f32 %v898_v13, %v785_v14 }
 0x214   :  { %v1288_v40 = vadd.f32 %v2739_v43, %v1252_v48  ;;  %v3256_v48 = vmax.f32 %v2556_v19, %v2558_v12 }
 0x215   :  { %v901_v50 = vpop.f32.mrf.mxu3  ;;  %v1121_v6 = vpop.f32.mrf.mxu2  ;;  %1058 = vmatmul.f32.vlgmr.msra.gmra.mxu1 %v3247_v37  ;;  %v3255_v37 = vmax.f32 %v2544_v60, %v2546_v32 }
 0x216   :  { %v1320_v22 = vmax.f32 %v1288_v40, 0.0  ;;  %v1122_v26 = vadd.f32 %v1121_v6, %v1008_v52  ;;  %v1011_v27 = vpop.f32.mrf.mxu0  ;;  %v902_v57 = vadd.f32 %v901_v50, %v788_v33 }
 0x218   :  { %1352 = vst [vmem:[%s3052_s3 + $0x68] sm:$0xff] %v1320_v22  ;;  %v1221_v20 = vmax.f32 %v896_v15, %v1122_v26 }
 0x21a   :  { %v1253_v53 = vmax.f32 %v3253_v10, %v1221_v20  ;;  %v791_v21 = vpop.f32.mrf.mxu1  ;;  %v3257_v20 = vmax.f32 %v2568_v41, %v2570_v61 }
 0x21c   :  { %v1289_v39 = vadd.f32 %v2739_v43, %v1253_v53 }
 0x21d   :  { %v904_v38 = vpop.f32.mrf.mxu3  ;;  %v1124_v8 = vpop.f32.mrf.mxu2 }
 0x21e   :  { %v1321_v1 = vmax.f32 %v1289_v39, 0.0  ;;  %v1125_v54 = vadd.f32 %v1124_v8, %v1011_v27  ;;  %v1014_v11 = vpop.f32.mrf.mxu0  ;;  %v905_v52 = vadd.f32 %v904_v38, %v791_v21 }
 0x220   :  { %1353 = vst [vmem:[%s3052_s3 + $0x70] sm:$0xff] %v1321_v1  ;;  %v1222_v16 = vmax.f32 %v899_v29, %v1125_v54  ;;  %v3258_v29 = vmax.f32 %v2580_v4, %v2582_v3 }
 0x222   :  { %v1254_v44 = vmax.f32 %v3254_v42, %v1222_v16  ;;  %v794_v18 = vpop.f32.mrf.mxu1 }
 0x224   :  { %v1290_v30 = vadd.f32 %v2739_v43, %v1254_v44 }
 0x225   :  { %v907_v58 = vpop.f32.mrf.mxu3  ;;  %v1127_v59 = vpop.f32.mrf.mxu2 }
 0x226   :  { %v1322_v28 = vmax.f32 %v1290_v30, 0.0  ;;  %v1128_v14 = vadd.f32 %v1127_v59, %v1014_v11  ;;  %v1017_v13 = vpop.f32.mrf.mxu0  ;;  %v908_v6 = vadd.f32 %v907_v58, %v794_v18  ;;  %v3259_v58 = vmax.f32 %v2592_v31, %v2594_v34 }
 0x228   :  { %1354 = vst [vmem:[%s3052_s3 + $0x78] sm:$0xff] %v1322_v28  ;;  %v1223_v36 = vmax.f32 %v902_v57, %v1128_v14 }
 0x22a   :  { %v1255_v23 = vmax.f32 %v3255_v37, %v1223_v36  ;;  %v797_v17 = vpop.f32.mrf.mxu1 }
 0x22c   :  { %v1291_v46 = vadd.f32 %v2739_v43, %v1255_v23 }
 0x22d   :  { %v910_v9 = vpop.f32.mrf.mxu3  ;;  %v1130_v5 = vpop.f32.mrf.mxu2 }
 0x22e   :  { %v1323_v62 = vmax.f32 %v1291_v46, 0.0  ;;  %v1131_v25 = vadd.f32 %v1130_v5, %v1017_v13  ;;  %v1020_v24 = vpop.f32.mrf.mxu0  ;;  %v911_v53 = vadd.f32 %v910_v9, %v797_v17  ;;  %v3260_v17 = vmax.f32 %v2604_v45, %v2606_v51 }
 0x230   :  { %1355 = vst [vmem:[%s3052_s3 + $0x80] sm:$0xff] %v1323_v62  ;;  %v1224_v35 = vmax.f32 %v905_v52, %v1131_v25 }
 0x232   :  { %v1256_v33 = vmax.f32 %v3256_v48, %v1224_v35  ;;  %v800_v60 = vpop.f32.mrf.mxu1  ;;  %v3261_v48 = vmax.f32 %v2616_v56, %v2618_v49 }
 0x234   :  { %v1292_v32 = vadd.f32 %v2739_v43, %v1256_v33 }
 0x235   :  { %v913_v40 = vpop.f32.mrf.mxu3  ;;  %v1133_v50 = vpop.f32.mrf.mxu2 }
 0x236   :  { %v1324_v15 = vmax.f32 %v1292_v32, 0.0  ;;  %v1134_v22 = vadd.f32 %v1133_v50, %v1020_v24  ;;  %v1023_v26 = vpop.f32.mrf.mxu0  ;;  %v914_v16 = vadd.f32 %v913_v40, %v800_v60 }
 0x238   :  { %1356 = vst [vmem:[%s3052_s3 + $0x88] sm:$0xff] %v1324_v15  ;;  %v1225_v27 = vmax.f32 %v908_v6, %v1134_v22 }
 0x23a   :  { %v1257_v47 = vmax.f32 %v3257_v20, %v1225_v27  ;;  %v803_v19 = vpop.f32.mrf.mxu1 }
 0x23c   :  { %v1293_v12 = vadd.f32 %v2739_v43, %v1257_v47 }
 0x23d   :  { %v916_v7 = vpop.f32.mrf.mxu3  ;;  %v1136_v10 = vpop.f32.mrf.mxu2 }
 0x23e   :  { %v1325_v21 = vmax.f32 %v1293_v12, 0.0  ;;  %v1137_v39 = vadd.f32 %v1136_v10, %v1023_v26  ;;  %v1026_v38 = vpop.f32.mrf.mxu0  ;;  %v917_v14 = vadd.f32 %v916_v7, %v803_v19  ;;  %v3262_v26 = vmax.f32 %v2628_v0, %v2630_v55 }
 0x240   :  { %1357 = vst [vmem:[%s3052_s3 + $0x90] sm:$0xff] %v1325_v21  ;;  %v1226_v8 = vmax.f32 %v911_v53, %v1137_v39  ;;  %v3263_v21 = vmax.f32 %v2640_v2, %v2642_v63 }
 0x242   :  { %v1258_v1 = vmax.f32 %v3258_v29, %v1226_v8  ;;  %v806_v41 = vpop.f32.mrf.mxu1 }
 0x244   :  { %v1294_v61 = vadd.f32 %v2739_v43, %v1258_v1 }
 0x245   :  { %v919_v54 = vpop.f32.mrf.mxu3  ;;  %v1139_v11 = vpop.f32.mrf.mxu2 }
 0x246   :  { %v1326_v42 = vmax.f32 %v1294_v61, 0.0  ;;  %v1140_v44 = vadd.f32 %v1139_v11, %v1026_v38  ;;  %v1029_v18 = vpop.f32.mrf.mxu0  ;;  %v920_v52 = vadd.f32 %v919_v54, %v806_v41  ;;  %v3264_v11 = vld [vmem:[#allocation47_spill] sm:$0xff] }
 0x248   :  { %1358 = vst [vmem:[%s3052_s3 + $0x98] sm:$0xff] %v1326_v42  ;;  %v1227_v30 = vmax.f32 %v914_v16, %v1140_v44  ;;  %v3265_v16 = vld [vmem:[#allocation48_spill] sm:$0xff] }
 0x249   :  { %v3266_v42 = vmax.f32 %v3264_v11, %v3265_v16 }
 0x24a   :  { %v1259_v59 = vmax.f32 %v3259_v58, %v1227_v30  ;;  %v809_v4 = vpop.f32.mrf.mxu1 }
 0x24c   :  { %v1295_v3 = vadd.f32 %v2739_v43, %v1259_v59 }
 0x24d   :  { %v922_v57 = vpop.f32.mrf.mxu3  ;;  %v1142_v28 = vpop.f32.mrf.mxu2 }
 0x24e   :  { %v1327_v13 = vmax.f32 %v1295_v3, 0.0  ;;  %v1143_v36 = vadd.f32 %v1142_v28, %v1029_v18  ;;  %v1032_v37 = vpop.f32.mrf.mxu0  ;;  %v923_v40 = vadd.f32 %v922_v57, %v809_v4  ;;  %v3267_v28 = vld [vmem:[#allocation49_spill] sm:$0xff] }
 0x250   :  { %1359 = vst [vmem:[%s3052_s3 + $0xa0] sm:$0xff] %v1327_v13  ;;  %v1228_v23 = vmax.f32 %v917_v14, %v1143_v36  ;;  %v3268_v14 = vld [vmem:[#allocation50_spill] sm:$0xff] }
 0x251   :  { %v3269_v13 = vmax.f32 %v3267_v28, %v3268_v14 }
 0x252   :  { %v1260_v46 = vmax.f32 %v3260_v17, %v1228_v23  ;;  %v812_v31 = vpop.f32.mrf.mxu1 }
 0x254   :  { %v1296_v34 = vadd.f32 %v2739_v43, %v1260_v46 }
 0x255   :  { %v925_v9 = vpop.f32.mrf.mxu3  ;;  %v1145_v5 = vpop.f32.mrf.mxu2 }
 0x256   :  { %v1328_v62 = vmax.f32 %v1296_v34, 0.0  ;;  %v1146_v25 = vadd.f32 %v1145_v5, %v1032_v37  ;;  %v1035_v24 = vpop.f32.mrf.mxu0  ;;  %v926_v19 = vadd.f32 %v925_v9, %v812_v31 }
 0x258   :  { %1360 = vst [vmem:[%s3052_s3 + $0xa8] sm:$0xff] %v1328_v62  ;;  %v1229_v35 = vmax.f32 %v920_v52, %v1146_v25  ;;  %v3270_v62 = vld [vmem:[#allocation51_spill] sm:$0xff]  ;;  %v3271_v25 = vld [vmem:[#allocation52_spill] sm:$0xff] }
 0x25a   :  { %v1261_v33 = vmax.f32 %v3261_v48, %v1229_v35  ;;  %v815_v45 = vpop.f32.mrf.mxu1 }
 0x25c   :  { %v1297_v51 = vadd.f32 %v2739_v43, %v1261_v33 }
 0x25d   :  { %v928_v60 = vpop.f32.mrf.mxu3  ;;  %v1148_v32 = vpop.f32.mrf.mxu2 }
 0x25e   :  { %v1329_v50 = vmax.f32 %v1297_v51, 0.0  ;;  %v1149_v6 = vadd.f32 %v1148_v32, %v1035_v24  ;;  %v1038_v15 = vpop.f32.mrf.mxu0  ;;  %v929_v29 = vadd.f32 %v928_v60, %v815_v45  ;;  %v3272_v24 = vmax.f32 %v3270_v62, %v3271_v25 }
 0x260   :  { %1361 = vst [vmem:[%s3052_s3 + $0xb0] sm:$0xff] %v1329_v50  ;;  %v1230_v22 = vmax.f32 %v923_v40, %v1149_v6 }
 0x262   :  { %v1262_v27 = vmax.f32 %v3262_v26, %v1230_v22  ;;  %v818_v56 = vpop.f32.mrf.mxu1  ;;  %v3274_v22 = vld [vmem:[#allocation53_spill] sm:$0xff] }
 0x264   :  { %v1298_v49 = vadd.f32 %v2739_v43, %v1262_v27 }
 0x265   :  { %v931_v20 = vpop.f32.mrf.mxu3  ;;  %v1151_v47 = vpop.f32.mrf.mxu2 }
 0x266   :  { %v1330_v12 = vmax.f32 %v1298_v49, 0.0  ;;  %v1152_v7 = vadd.f32 %v1151_v47, %v1038_v15  ;;  %v1041_v10 = vpop.f32.mrf.mxu0  ;;  %v932_v58 = vadd.f32 %v931_v20, %v818_v56  ;;  %v3273_v15 = vld [vmem:[#allocation3_spill] sm:$0xff] }
 0x267   :  { %v3275_v26 = vmax.f32 %v3273_v15, %v3274_v22 }
 0x268   :  { %1362 = vst [vmem:[%s3052_s3 + $0xb8] sm:$0xff] %v1330_v12  ;;  %v1231_v53 = vmax.f32 %v926_v19, %v1152_v7 }
 0x26a   :  { %v1263_v39 = vmax.f32 %v3263_v21, %v1231_v53  ;;  %v821_v0 = vpop.f32.mrf.mxu1  ;;  %v3276_v53 = vld [vmem:[#allocation2_spill] sm:$0xff]  ;;  %v3277_v21 = vld [vmem:[#allocation5_spill] sm:$0xff] }
 0x26c   :  { %v1299_v55 = vadd.f32 %v2739_v43, %v1263_v39  ;;  %v3278_v39 = vmax.f32 %v3276_v53, %v3277_v21 }
 0x26d   :  { %v934_v38 = vpop.f32.mrf.mxu3  ;;  %v1154_v8 = vpop.f32.mrf.mxu2 }
 0x26e   :  { %v1331_v1 = vmax.f32 %v1299_v55, 0.0  ;;  %v1155_v41 = vadd.f32 %v1154_v8, %v1041_v10  ;;  %v1044_v61 = vpop.f32.mrf.mxu0  ;;  %v935_v31 = vadd.f32 %v934_v38, %v821_v0 }
 0x270   :  { %1363 = vst [vmem:[%s3052_s3 + $0xc0] sm:$0xff] %v1331_v1  ;;  %v1232_v54 = vmax.f32 %v929_v29, %v1155_v41 }
 0x272   :  { %v1264_v44 = vmax.f32 %v3266_v42, %v1232_v54  ;;  %v824_v2 = vpop.f32.mrf.mxu1 }
 0x274   :  { %v1300_v63 = vadd.f32 %v2739_v43, %v1264_v44 }
 0x275   :  { %v937_v18 = vpop.f32.mrf.mxu3  ;;  %v1157_v30 = vpop.f32.mrf.mxu2 }
 0x276   :  { %v1332_v59 = vmax.f32 %v1300_v63, 0.0  ;;  %v1158_v4 = vadd.f32 %v1157_v30, %v1044_v61  ;;  %v1047_v3 = vpop.f32.mrf.mxu0  ;;  %v938_v60 = vadd.f32 %v937_v18, %v824_v2  ;;  %v3279_v2 = vld [vmem:[#allocation4_spill] sm:$0xff]  ;;  %v3280_v63 = vld [vmem:[#allocation7_spill] sm:$0xff] }
 0x277   :  { %v3281_v18 = vmax.f32 %v3279_v2, %v3280_v63 }
 0x278   :  { %1364 = vst [vmem:[%s3052_s3 + $0xc8] sm:$0xff] %v1332_v59  ;;  %v1233_v57 = vmax.f32 %v932_v58, %v1158_v4  ;;  %v3282_v58 = vld [vmem:[#allocation6_spill] sm:$0xff]  ;;  %v3283_v59 = vld [vmem:[#allocation11_spill] sm:$0xff] }
 0x279   :  { %v3284_v4 = vmax.f32 %v3282_v58, %v3283_v59 }
 0x27a   :  { %v1265_v36 = vmax.f32 %v3269_v13, %v1233_v57  ;;  %v827_v37 = vpop.f32.mrf.mxu1 }
 0x27c   :  { %v1301_v23 = vadd.f32 %v2739_v43, %v1265_v36 }
 0x27d   :  { %v940_v17 = vpop.f32.mrf.mxu3  ;;  %v1160_v46 = vpop.f32.mrf.mxu2 }
 0x27e   :  { %v1333_v34 = vmax.f32 %v1301_v23, 0.0  ;;  %v1161_v9 = vadd.f32 %v1160_v46, %v1047_v3  ;;  %v1050_v5 = vpop.f32.mrf.mxu0  ;;  %v941_v19 = vadd.f32 %v940_v17, %v827_v37 }
 0x280   :  { %1365 = vst [vmem:[%s3052_s3 + $0xd0] sm:$0xff] %v1333_v34  ;;  %v1234_v52 = vmax.f32 %v935_v31, %v1161_v9 }
 0x282   :  { %v1266_v35 = vmax.f32 %v3272_v24, %v1234_v52  ;;  %v830_v48 = vpop.f32.mrf.mxu1 }
 0x284   :  { %v1302_v33 = vadd.f32 %v2739_v43, %v1266_v35 }
 0x285   :  { %v943_v45 = vpop.f32.mrf.mxu3  ;;  %v1163_v51 = vpop.f32.mrf.mxu2 }
 0x286   :  { %v1334_v32 = vmax.f32 %v1302_v33, 0.0  ;;  %v1164_v40 = vadd.f32 %v1163_v51, %v1050_v5  ;;  %v1053_v6 = vpop.f32.mrf.mxu0  ;;  %v944_v29 = vadd.f32 %v943_v45, %v830_v48 }
 0x288   :  { %1366 = vst [vmem:[%s3052_s3 + $0xd8] sm:$0xff] %v1334_v32  ;;  %v1235_v50 = vmax.f32 %v938_v60, %v1164_v40 }
 0x28a   :  { %v1267_v27 = vmax.f32 %v3275_v26, %v1235_v50  ;;  %v833_v56 = vpop.f32.mrf.mxu1 }
 0x28c   :  { %v1303_v49 = vadd.f32 %v2739_v43, %v1267_v27 }
 0x28d   :  { %v946_v20 = vpop.f32.mrf.mxu3  ;;  %v1166_v47 = vpop.f32.mrf.mxu2 }
 0x28e   :  { %v1335_v12 = vmax.f32 %v1303_v49, 0.0  ;;  %v1167_v7 = vadd.f32 %v1166_v47, %v1053_v6  ;;  %v1056_v55 = vpop.f32.mrf.mxu0  ;;  %v947_v61 = vadd.f32 %v946_v20, %v833_v56 }
 0x290   :  { %1367 = vst [vmem:[%s3052_s3 + $0xe0] sm:$0xff] %v1335_v12  ;;  %v1236_v10 = vmax.f32 %v941_v19, %v1167_v7 }
 0x292   :  { %v1268_v0 = vmax.f32 %v3278_v39, %v1236_v10  ;;  %v1059_v38 = vpop.f32.mrf.mxu1 }
 0x294   :  { %v1304_v8 = vadd.f32 %v2739_v43, %v1268_v0 }
 0x295   :  { %v1169_v1 = vpop.f32.mrf.mxu2  ;;  %v1172_v41 = vpop.f32.mrf.mxu3 }
 0x296   :  { %v1336_v54 = vmax.f32 %v1304_v8, 0.0  ;;  %v1170_v11 = vadd.f32 %v1169_v1, %v1056_v55  ;;  %v1173_v16 = vadd.f32 %v1172_v41, %v1059_v38 }
 0x298   :  { %1368 = vst [vmem:[%s3052_s3 + $0xe8] sm:$0xff] %v1336_v54  ;;  %v1237_v42 = vmax.f32 %v944_v29, %v1170_v11  ;;  %v1238_v44 = vmax.f32 %v947_v61, %v1173_v16 }
 0x29a   :  { %v1269_v30 = vmax.f32 %v3281_v18, %v1237_v42  ;;  %v1270_v3 = vmax.f32 %v3284_v4, %v1238_v44 }
 0x29c   :  { %v1305_v57 = vadd.f32 %v2739_v43, %v1269_v30  ;;  %v1306_v28 = vadd.f32 %v2739_v43, %v1270_v3 }
 0x29e   :  { %v1337_v14 = vmax.f32 %v1305_v57, 0.0  ;;  %v1338_v13 = vmax.f32 %v1306_v28, 0.0 }
 0x2a0   :  { %1369 = vst [vmem:[%s3052_s3 + $0xf0] sm:$0xff] %v1337_v14 }
 0x2a1   :  { %1370 = vst [vmem:[%s3052_s3 + $0xf8] sm:$0xff] %v1338_v13 }

</bundles_post_ra>
